<compile_context>
chip_gen: v5e
topology: v5e:2x2
jax: 0.10.0
libtpu: 0.0.40
codegen_flags: <defaults>
</compile_context>

<pallas_src>
import math
import jax
import jax.numpy as jnp
from jax.experimental import pallas as pl
from jax.experimental.pallas import tpu as pltpu

# ----- small, deterministic hyperparameters consistent with the module -----
NUM_LAYERS = 2
D_MODEL = 32          # d_model
NHEAD = 4             # layer_kwargs: nhead
DIM_FF = 64           # layer_kwargs: dim_feedforward
SEQ = 8
BATCH = 2
ROWS = SEQ * BATCH    # flattened activation rows (seq-major: row = s*BATCH + n)
HEAD_DIM = D_MODEL // NHEAD
EPS = 1e-5


def _layernorm(x, w, b):
    mu = jnp.mean(x, axis=-1, keepdims=True)
    var = jnp.mean(jnp.square(x - mu), axis=-1, keepdims=True)
    return (x - mu) * jax.lax.rsqrt(var + EPS) * w + b


def fused_transformer_kernel(x_ref, mask_ref,
                             wqkv_ref, bqkv_ref, wo_ref, bo_ref,
                             w1_ref, b1_ref, w2_ref, b2_ref,
                             g1_ref, be1_ref, g2_ref, be2_ref,
                             gn_ref, bn_ref,
                             o_ref):
    """Both encoder layers + final LayerNorm, fully fused (eval mode).

    x_ref / o_ref : (ROWS, D_MODEL) float32, rows in seq-major order.
    mask_ref      : (ROWS, ROWS) additive bias, 0 for same-batch pairs,
                    -1e30 for cross-batch pairs (keeps batches independent).
    Per-layer params are stacked on a leading NUM_LAYERS axis; the softmax
    scale is already folded into the Q part of wqkv/bqkv.
    """
    x = x_ref[...]
    mask_bias = mask_ref[...]
    contract_last = (((1,), (1,)), ((), ()))

    for l in range(NUM_LAYERS):                      # static unroll (2 layers)
        # --- QKV projection: one (ROWS,E)x(E,3E) MXU matmul ---
        qkv = jnp.dot(x, wqkv_ref[l], preferred_element_type=jnp.float32) + bqkv_ref[l]

        # --- multi-head self-attention (all batches at once via mask) ---
        wo_l = wo_ref[l]                             # (E, E), loaded once
        attn = None
        for h in range(NHEAD):                       # static unroll (tiny)
            c0 = h * HEAD_DIM
            qh = qkv[:, c0:c0 + HEAD_DIM]                            # pre-scaled
            kh = qkv[:, D_MODEL + c0:D_MODEL + c0 + HEAD_DIM]
            vh = qkv[:, 2 * D_MODEL + c0:2 * D_MODEL + c0 + HEAD_DIM]
            s = jax.lax.dot_general(qh, kh, contract_last,
                                    preferred_element_type=jnp.float32)
            s = s + mask_bias                                        # (ROWS, ROWS)
            s = s - jnp.max(s, axis=-1, keepdims=True)
            p = jnp.exp(s)
            denom = jnp.sum(p, axis=-1, keepdims=True)
            p = p * pl.reciprocal(denom, approx=False)
            head_out = jnp.dot(p, vh, preferred_element_type=jnp.float32)
            # Fold head directly into the output projection (8-sublane-aligned
            # static row slice of Wo) — no scratch, no masked column stores.
            contrib = jnp.dot(head_out, wo_l[c0:c0 + HEAD_DIM, :],
                              preferred_element_type=jnp.float32)
            attn = contrib if attn is None else attn + contrib
        attn = attn + bo_ref[l]

        # --- residual + LayerNorm1 ---
        x = _layernorm(x + attn, g1_ref[l], be1_ref[l])

        # --- feed-forward (relu) ---
        ff = jnp.dot(x, w1_ref[l], preferred_element_type=jnp.float32) + b1_ref[l]
        ff = jnp.maximum(ff, 0.0)
        ff = jnp.dot(ff, w2_ref[l], preferred_element_type=jnp.float32) + b2_ref[l]

        # --- residual + LayerNorm2 ---
        x = _layernorm(x + ff, g2_ref[l], be2_ref[l])

    # --- final encoder-level norm (the `norm` argument of TransformerEncoder) ---
    o_ref[...] = _layernorm(x, gn_ref[...], bn_ref[...])


_N_INPUTS = 16
_fused_call = pl.pallas_call(
    fused_transformer_kernel,
    out_shape=jax.ShapeDtypeStruct((ROWS, D_MODEL), jnp.float32),
    in_specs=[pl.BlockSpec(memory_space=pltpu.MemorySpace.VMEM)] * _N_INPUTS,
    out_specs=pl.BlockSpec(memory_space=pltpu.MemorySpace.VMEM),
)


@jax.jit
def transformer_forward(x_sne, kp):
    """x_sne: (SEQ, BATCH, D_MODEL) float32 -> (SEQ, BATCH, D_MODEL)."""
    x = x_sne.reshape(ROWS, D_MODEL)          # seq-major flatten; no transpose
    y = _fused_call(x, kp["mask_bias"],
                    kp["wqkv_t"], kp["bqkv"], kp["wo_t"], kp["bo"],
                    kp["w1_t"], kp["b1"], kp["w2_t"], kp["b2"],
                    kp["ln1_w"], kp["ln1_b"], kp["ln2_w"], kp["ln2_b"],
                    kp["norm_w"], kp["norm_b"])
    return y.reshape(SEQ, BATCH, D_MODEL)


def init_params(key):
    """Deterministic synthetic parameters, PyTorch-shaped (raw) layout."""
    keys = jax.random.split(key, NUM_LAYERS * 8)
    layers = []
    for i in range(NUM_LAYERS):
        k = keys[8 * i:8 * (i + 1)]
        layers.append(dict(
            in_proj_w=jax.random.normal(k[0], (3 * D_MODEL, D_MODEL), jnp.float32) * 0.05,
            in_proj_b=jax.random.normal(k[1], (3 * D_MODEL,), jnp.float32) * 0.01,
            out_proj_w=jax.random.normal(k[2], (D_MODEL, D_MODEL), jnp.float32) * 0.05,
            out_proj_b=jax.random.normal(k[3], (D_MODEL,), jnp.float32) * 0.01,
            lin1_w=jax.random.normal(k[4], (DIM_FF, D_MODEL), jnp.float32) * 0.05,
            lin1_b=jax.random.normal(k[5], (DIM_FF,), jnp.float32) * 0.01,
            lin2_w=jax.random.normal(k[6], (D_MODEL, DIM_FF), jnp.float32) * 0.05,
            lin2_b=jax.random.normal(k[7], (D_MODEL,), jnp.float32) * 0.01,
            ln1_w=jnp.ones((D_MODEL,), jnp.float32),
            ln1_b=jnp.zeros((D_MODEL,), jnp.float32),
            ln2_w=jnp.ones((D_MODEL,), jnp.float32),
            ln2_b=jnp.zeros((D_MODEL,), jnp.float32),
        ))
    return dict(layers=layers,
                norm_w=jnp.ones((D_MODEL,), jnp.float32),
                norm_b=jnp.zeros((D_MODEL,), jnp.float32))


def prepare_params(raw):
    """One-time transform: transpose, stack per layer, fold softmax scale,
    and precompute the cross-batch attention mask."""
    scale = 1.0 / math.sqrt(HEAD_DIM)
    qscale = jnp.concatenate([jnp.full((D_MODEL,), scale, jnp.float32),
                              jnp.ones((2 * D_MODEL,), jnp.float32)])
    wqkv_t, bqkv, wo_t, bo = [], [], [], []
    w1_t, b1, w2_t, b2 = [], [], [], []
    g1, be1, g2, be2 = [], [], [], []
    for lp in raw["layers"]:
        w_scaled = lp["in_proj_w"] * qscale[:, None]        # scale Q rows
        b_scaled = lp["in_proj_b"] * qscale
        wqkv_t.append(w_scaled.T)                           # (E, 3E)
        bqkv.append(b_scaled[None, :])                      # (1, 3E)
        wo_t.append(lp["out_proj_w"].T)                     # (E, E)
        bo.append(lp["out_proj_b"][None, :])
        w1_t.append(lp["lin1_w"].T)                         # (E, FF)
        b1.append(lp["lin1_b"][None, :])
        w2_t.append(lp["lin2_w"].T)                         # (FF, E)
        b2.append(lp["lin2_b"][None, :])
        g1.append(lp["ln1_w"][None, :]); be1.append(lp["ln1_b"][None, :])
        g2.append(lp["ln2_w"][None, :]); be2.append(lp["ln2_b"][None, :])

    r = jnp.arange(ROWS, dtype=jnp.int32)
    same_batch = (r[:, None] % BATCH) == (r[None, :] % BATCH)
    mask_bias = jnp.where(same_batch, 0.0, -1e30).astype(jnp.float32)

    stack = lambda xs: jnp.stack(xs, axis=0)
    return dict(
        mask_bias=mask_bias,
        wqkv_t=stack(wqkv_t), bqkv=stack(bqkv), wo_t=stack(wo_t), bo=stack(bo),
        w1_t=stack(w1_t), b1=stack(b1), w2_t=stack(w2_t), b2=stack(b2),
        ln1_w=stack(g1), ln1_b=stack(be1), ln2_w=stack(g2), ln2_b=stack(be2),
        norm_w=raw["norm_w"][None, :], norm_b=raw["norm_b"][None, :],
    )


def reference_forward(x_sne, raw):
    """Pure-JAX reference mirroring PyTorch TransformerEncoder (eval mode)."""
    def ln(x, w, b):
        mu = x.mean(-1, keepdims=True)
        var = ((x - mu) ** 2).mean(-1, keepdims=True)
        return (x - mu) / jnp.sqrt(var + EPS) * w + b

    x = x_sne
    for lp in raw["layers"]:
        qkv = x @ lp["in_proj_w"].T + lp["in_proj_b"]
        q, k, v = jnp.split(qkv, 3, axis=-1)
        q = q.reshape(SEQ, BATCH, NHEAD, HEAD_DIM)
        k = k.reshape(SEQ, BATCH, NHEAD, HEAD_DIM)
        v = v.reshape(SEQ, BATCH, NHEAD, HEAD_DIM)
        scores = jnp.einsum('snhd,tnhd->nhst', q, k) / math.sqrt(HEAD_DIM)
        p = jax.nn.softmax(scores, axis=-1)
        o = jnp.einsum('nhst,tnhd->snhd', p, v).reshape(SEQ, BATCH, D_MODEL)
        attn = o @ lp["out_proj_w"].T + lp["out_proj_b"]
        x = ln(x + attn, lp["ln1_w"], lp["ln1_b"])
        ff = jax.nn.relu(x @ lp["lin1_w"].T + lp["lin1_b"])
        ff = ff @ lp["lin2_w"].T + lp["lin2_b"]
        x = ln(x + ff, lp["ln2_w"], lp["ln2_b"])
    return ln(x, raw["norm_w"], raw["norm_b"])


if __name__ == "__main__":
    key = jax.random.PRNGKey(0)
    kx, kp = jax.random.split(key)
    x = jax.random.normal(kx, (SEQ, BATCH, D_MODEL), jnp.float32)
    raw = init_params(kp)
    kparams = prepare_params(raw)          # one-time weight transform

    out = transformer_forward(x, kparams)
    out = jax.block_until_ready(out)

    ref = reference_forward(x, raw)
    assert out.shape == (SEQ, BATCH, D_MODEL)
    max_err = float(jnp.max(jnp.abs(out - ref)))
    assert max_err < 2e-4, f"mismatch vs reference, max abs err = {max_err}"
    print("KERNEL_OK")
</pallas_src>

<mosaic_0001>
module attributes {stable_mosaic.version = 11 : i64} {
  func.func @fused_transformer_kernel(%arg0: memref<16x32xf32, #tpu.memory_space<vmem>>, %arg1: memref<16x16xf32, #tpu.memory_space<vmem>>, %arg2: memref<2x32x96xf32, #tpu.memory_space<vmem>>, %arg3: memref<2x1x96xf32, #tpu.memory_space<vmem>>, %arg4: memref<2x32x32xf32, #tpu.memory_space<vmem>>, %arg5: memref<2x1x32xf32, #tpu.memory_space<vmem>>, %arg6: memref<2x32x64xf32, #tpu.memory_space<vmem>>, %arg7: memref<2x1x64xf32, #tpu.memory_space<vmem>>, %arg8: memref<2x64x32xf32, #tpu.memory_space<vmem>>, %arg9: memref<2x1x32xf32, #tpu.memory_space<vmem>>, %arg10: memref<2x1x32xf32, #tpu.memory_space<vmem>>, %arg11: memref<2x1x32xf32, #tpu.memory_space<vmem>>, %arg12: memref<2x1x32xf32, #tpu.memory_space<vmem>>, %arg13: memref<2x1x32xf32, #tpu.memory_space<vmem>>, %arg14: memref<1x32xf32, #tpu.memory_space<vmem>>, %arg15: memref<1x32xf32, #tpu.memory_space<vmem>>, %arg16: memref<16x32xf32, #tpu.memory_space<vmem>>) attributes {dimension_semantics = [], scalar_prefetch = 0 : i64, scratch_operands = 0 : i64, tpu.core_type = #tpu.core_type<tc>} {
    %c0 = arith.constant 0 : index
    %c0_0 = arith.constant 0 : index
    %0 = vector.load %arg0[%c0, %c0_0] : memref<16x32xf32, #tpu.memory_space<vmem>>, vector<16x32xf32>
    %c0_1 = arith.constant 0 : index
    %c0_2 = arith.constant 0 : index
    %1 = vector.load %arg1[%c0_1, %c0_2] : memref<16x16xf32, #tpu.memory_space<vmem>>, vector<16x16xf32>
    %c0_3 = arith.constant 0 : index
    %c0_4 = arith.constant 0 : index
    %c0_5 = arith.constant 0 : index
    %2 = vector.load %arg2[%c0_3, %c0_4, %c0_5] : memref<2x32x96xf32, #tpu.memory_space<vmem>>, vector<1x32x96xf32>
    %3 = vector.shape_cast %2 : vector<1x32x96xf32> to vector<32x96xf32>
    %cst = arith.constant dense<0.000000e+00> : vector<16x96xf32>
    %4 = tpu.matmul %0, %3, %cst {dimension_numbers = #tpu.dot_dimension_numbers<[1], [0], [0], [1], [0, 0, 1, 1], [], []>} : vector<16x32xf32>, vector<32x96xf32>, vector<16x96xf32> -> vector<16x96xf32>
    %c0_6 = arith.constant 0 : index
    %c0_7 = arith.constant 0 : index
    %c0_8 = arith.constant 0 : index
    %5 = vector.load %arg3[%c0_6, %c0_7, %c0_8] : memref<2x1x96xf32, #tpu.memory_space<vmem>>, vector<1x1x96xf32>
    %6 = vector.shape_cast %5 : vector<1x1x96xf32> to vector<1x96xf32>
    %7 = vector.broadcast %6 : vector<1x96xf32> to vector<16x96xf32>
    %8 = arith.addf %4, %7 : vector<16x96xf32>
    %c0_9 = arith.constant 0 : index
    %c0_10 = arith.constant 0 : index
    %c0_11 = arith.constant 0 : index
    %9 = vector.load %arg4[%c0_9, %c0_10, %c0_11] : memref<2x32x32xf32, #tpu.memory_space<vmem>>, vector<1x32x32xf32>
    %10 = vector.shape_cast %9 : vector<1x32x32xf32> to vector<32x32xf32>
    %11 = vector.extract_strided_slice %8 {offsets = [0, 0], sizes = [16, 8], strides = [1, 1]} : vector<16x96xf32> to vector<16x8xf32>
    %12 = vector.extract_strided_slice %8 {offsets = [0, 32], sizes = [16, 8], strides = [1, 1]} : vector<16x96xf32> to vector<16x8xf32>
    %13 = vector.extract_strided_slice %8 {offsets = [0, 64], sizes = [16, 8], strides = [1, 1]} : vector<16x96xf32> to vector<16x8xf32>
    %cst_12 = arith.constant dense<0.000000e+00> : vector<16x16xf32>
    %14 = tpu.matmul %11, %12, %cst_12 {dimension_numbers = #tpu.dot_dimension_numbers<[1], [1], [0], [0], [0, 0, 1, 0], [], []>} : vector<16x8xf32>, vector<16x8xf32>, vector<16x16xf32> -> vector<16x16xf32>
    %15 = arith.addf %14, %1 : vector<16x16xf32>
    %cst_13 = arith.constant dense<0xFF800000> : vector<16xf32>
    %16 = vector.multi_reduction <maximumf>, %15, %cst_13 [1] : vector<16x16xf32> to vector<16xf32>
    %17 = vector.shape_cast %16 : vector<16xf32> to vector<16x1xf32>
    %18 = vector.broadcast %17 : vector<16x1xf32> to vector<16x16xf32>
    %19 = arith.subf %15, %18 : vector<16x16xf32>
    %20 = math.exp %19 : vector<16x16xf32>
    %cst_14 = arith.constant dense<0.000000e+00> : vector<16xf32>
    %21 = vector.multi_reduction <add>, %20, %cst_14 [1] : vector<16x16xf32> to vector<16xf32>
    %22 = vector.shape_cast %21 : vector<16xf32> to vector<16x1xf32>
    %23 = tpu.reciprocal %22 : vector<16x1xf32> -> vector<16x1xf32>
    %24 = vector.broadcast %23 : vector<16x1xf32> to vector<16x16xf32>
    %25 = arith.mulf %20, %24 : vector<16x16xf32>
    %cst_15 = arith.constant dense<0.000000e+00> : vector<16x8xf32>
    %26 = tpu.matmul %25, %13, %cst_15 {dimension_numbers = #tpu.dot_dimension_numbers<[1], [0], [0], [1], [0, 0, 1, 1], [], []>} : vector<16x16xf32>, vector<16x8xf32>, vector<16x8xf32> -> vector<16x8xf32>
    %27 = vector.extract_strided_slice %10 {offsets = [0, 0], sizes = [8, 32], strides = [1, 1]} : vector<32x32xf32> to vector<8x32xf32>
    %cst_16 = arith.constant dense<0.000000e+00> : vector<16x32xf32>
    %28 = tpu.matmul %26, %27, %cst_16 {dimension_numbers = #tpu.dot_dimension_numbers<[1], [0], [0], [1], [0, 0, 1, 1], [], []>} : vector<16x8xf32>, vector<8x32xf32>, vector<16x32xf32> -> vector<16x32xf32>
    %29 = vector.extract_strided_slice %8 {offsets = [0, 8], sizes = [16, 8], strides = [1, 1]} : vector<16x96xf32> to vector<16x8xf32>
    %30 = vector.extract_strided_slice %8 {offsets = [0, 40], sizes = [16, 8], strides = [1, 1]} : vector<16x96xf32> to vector<16x8xf32>
    %31 = vector.extract_strided_slice %8 {offsets = [0, 72], sizes = [16, 8], strides = [1, 1]} : vector<16x96xf32> to vector<16x8xf32>
    %cst_17 = arith.constant dense<0.000000e+00> : vector<16x16xf32>
    %32 = tpu.matmul %29, %30, %cst_17 {dimension_numbers = #tpu.dot_dimension_numbers<[1], [1], [0], [0], [0, 0, 1, 0], [], []>} : vector<16x8xf32>, vector<16x8xf32>, vector<16x16xf32> -> vector<16x16xf32>
    %33 = arith.addf %32, %1 : vector<16x16xf32>
    %cst_18 = arith.constant dense<0xFF800000> : vector<16xf32>
    %34 = vector.multi_reduction <maximumf>, %33, %cst_18 [1] : vector<16x16xf32> to vector<16xf32>
    %35 = vector.shape_cast %34 : vector<16xf32> to vector<16x1xf32>
    %36 = vector.broadcast %35 : vector<16x1xf32> to vector<16x16xf32>
    %37 = arith.subf %33, %36 : vector<16x16xf32>
    %38 = math.exp %37 : vector<16x16xf32>
    %cst_19 = arith.constant dense<0.000000e+00> : vector<16xf32>
    %39 = vector.multi_reduction <add>, %38, %cst_19 [1] : vector<16x16xf32> to vector<16xf32>
    %40 = vector.shape_cast %39 : vector<16xf32> to vector<16x1xf32>
    %41 = tpu.reciprocal %40 : vector<16x1xf32> -> vector<16x1xf32>
    %42 = vector.broadcast %41 : vector<16x1xf32> to vector<16x16xf32>
    %43 = arith.mulf %38, %42 : vector<16x16xf32>
    %cst_20 = arith.constant dense<0.000000e+00> : vector<16x8xf32>
    %44 = tpu.matmul %43, %31, %cst_20 {dimension_numbers = #tpu.dot_dimension_numbers<[1], [0], [0], [1], [0, 0, 1, 1], [], []>} : vector<16x16xf32>, vector<16x8xf32>, vector<16x8xf32> -> vector<16x8xf32>
    %45 = vector.extract_strided_slice %10 {offsets = [8, 0], sizes = [8, 32], strides = [1, 1]} : vector<32x32xf32> to vector<8x32xf32>
    %cst_21 = arith.constant dense<0.000000e+00> : vector<16x32xf32>
    %46 = tpu.matmul %44, %45, %cst_21 {dimension_numbers = #tpu.dot_dimension_numbers<[1], [0], [0], [1], [0, 0, 1, 1], [], []>} : vector<16x8xf32>, vector<8x32xf32>, vector<16x32xf32> -> vector<16x32xf32>
    %47 = arith.addf %28, %46 : vector<16x32xf32>
    %48 = vector.extract_strided_slice %8 {offsets = [0, 16], sizes = [16, 8], strides = [1, 1]} : vector<16x96xf32> to vector<16x8xf32>
    %49 = vector.extract_strided_slice %8 {offsets = [0, 48], sizes = [16, 8], strides = [1, 1]} : vector<16x96xf32> to vector<16x8xf32>
    %50 = vector.extract_strided_slice %8 {offsets = [0, 80], sizes = [16, 8], strides = [1, 1]} : vector<16x96xf32> to vector<16x8xf32>
    %cst_22 = arith.constant dense<0.000000e+00> : vector<16x16xf32>
    %51 = tpu.matmul %48, %49, %cst_22 {dimension_numbers = #tpu.dot_dimension_numbers<[1], [1], [0], [0], [0, 0, 1, 0], [], []>} : vector<16x8xf32>, vector<16x8xf32>, vector<16x16xf32> -> vector<16x16xf32>
    %52 = arith.addf %51, %1 : vector<16x16xf32>
    %cst_23 = arith.constant dense<0xFF800000> : vector<16xf32>
    %53 = vector.multi_reduction <maximumf>, %52, %cst_23 [1] : vector<16x16xf32> to vector<16xf32>
    %54 = vector.shape_cast %53 : vector<16xf32> to vector<16x1xf32>
    %55 = vector.broadcast %54 : vector<16x1xf32> to vector<16x16xf32>
    %56 = arith.subf %52, %55 : vector<16x16xf32>
    %57 = math.exp %56 : vector<16x16xf32>
    %cst_24 = arith.constant dense<0.000000e+00> : vector<16xf32>
    %58 = vector.multi_reduction <add>, %57, %cst_24 [1] : vector<16x16xf32> to vector<16xf32>
    %59 = vector.shape_cast %58 : vector<16xf32> to vector<16x1xf32>
    %60 = tpu.reciprocal %59 : vector<16x1xf32> -> vector<16x1xf32>
    %61 = vector.broadcast %60 : vector<16x1xf32> to vector<16x16xf32>
    %62 = arith.mulf %57, %61 : vector<16x16xf32>
    %cst_25 = arith.constant dense<0.000000e+00> : vector<16x8xf32>
    %63 = tpu.matmul %62, %50, %cst_25 {dimension_numbers = #tpu.dot_dimension_numbers<[1], [0], [0], [1], [0, 0, 1, 1], [], []>} : vector<16x16xf32>, vector<16x8xf32>, vector<16x8xf32> -> vector<16x8xf32>
    %64 = vector.extract_strided_slice %10 {offsets = [16, 0], sizes = [8, 32], strides = [1, 1]} : vector<32x32xf32> to vector<8x32xf32>
    %cst_26 = arith.constant dense<0.000000e+00> : vector<16x32xf32>
    %65 = tpu.matmul %63, %64, %cst_26 {dimension_numbers = #tpu.dot_dimension_numbers<[1], [0], [0], [1], [0, 0, 1, 1], [], []>} : vector<16x8xf32>, vector<8x32xf32>, vector<16x32xf32> -> vector<16x32xf32>
    %66 = arith.addf %47, %65 : vector<16x32xf32>
    %67 = vector.extract_strided_slice %8 {offsets = [0, 24], sizes = [16, 8], strides = [1, 1]} : vector<16x96xf32> to vector<16x8xf32>
    %68 = vector.extract_strided_slice %8 {offsets = [0, 56], sizes = [16, 8], strides = [1, 1]} : vector<16x96xf32> to vector<16x8xf32>
    %69 = vector.extract_strided_slice %8 {offsets = [0, 88], sizes = [16, 8], strides = [1, 1]} : vector<16x96xf32> to vector<16x8xf32>
    %cst_27 = arith.constant dense<0.000000e+00> : vector<16x16xf32>
    %70 = tpu.matmul %67, %68, %cst_27 {dimension_numbers = #tpu.dot_dimension_numbers<[1], [1], [0], [0], [0, 0, 1, 0], [], []>} : vector<16x8xf32>, vector<16x8xf32>, vector<16x16xf32> -> vector<16x16xf32>
    %71 = arith.addf %70, %1 : vector<16x16xf32>
    %cst_28 = arith.constant dense<0xFF800000> : vector<16xf32>
    %72 = vector.multi_reduction <maximumf>, %71, %cst_28 [1] : vector<16x16xf32> to vector<16xf32>
    %73 = vector.shape_cast %72 : vector<16xf32> to vector<16x1xf32>
    %74 = vector.broadcast %73 : vector<16x1xf32> to vector<16x16xf32>
    %75 = arith.subf %71, %74 : vector<16x16xf32>
    %76 = math.exp %75 : vector<16x16xf32>
    %cst_29 = arith.constant dense<0.000000e+00> : vector<16xf32>
    %77 = vector.multi_reduction <add>, %76, %cst_29 [1] : vector<16x16xf32> to vector<16xf32>
    %78 = vector.shape_cast %77 : vector<16xf32> to vector<16x1xf32>
    %79 = tpu.reciprocal %78 : vector<16x1xf32> -> vector<16x1xf32>
    %80 = vector.broadcast %79 : vector<16x1xf32> to vector<16x16xf32>
    %81 = arith.mulf %76, %80 : vector<16x16xf32>
    %cst_30 = arith.constant dense<0.000000e+00> : vector<16x8xf32>
    %82 = tpu.matmul %81, %69, %cst_30 {dimension_numbers = #tpu.dot_dimension_numbers<[1], [0], [0], [1], [0, 0, 1, 1], [], []>} : vector<16x16xf32>, vector<16x8xf32>, vector<16x8xf32> -> vector<16x8xf32>
    %83 = vector.extract_strided_slice %10 {offsets = [24, 0], sizes = [8, 32], strides = [1, 1]} : vector<32x32xf32> to vector<8x32xf32>
    %cst_31 = arith.constant dense<0.000000e+00> : vector<16x32xf32>
    %84 = tpu.matmul %82, %83, %cst_31 {dimension_numbers = #tpu.dot_dimension_numbers<[1], [0], [0], [1], [0, 0, 1, 1], [], []>} : vector<16x8xf32>, vector<8x32xf32>, vector<16x32xf32> -> vector<16x32xf32>
    %85 = arith.addf %66, %84 : vector<16x32xf32>
    %c0_32 = arith.constant 0 : index
    %c0_33 = arith.constant 0 : index
    %c0_34 = arith.constant 0 : index
    %86 = vector.load %arg5[%c0_32, %c0_33, %c0_34] : memref<2x1x32xf32, #tpu.memory_space<vmem>>, vector<1x1x32xf32>
    %87 = vector.shape_cast %86 : vector<1x1x32xf32> to vector<1x32xf32>
    %88 = vector.broadcast %87 : vector<1x32xf32> to vector<16x32xf32>
    %89 = arith.addf %85, %88 : vector<16x32xf32>
    %90 = arith.addf %0, %89 : vector<16x32xf32>
    %c0_35 = arith.constant 0 : index
    %c0_36 = arith.constant 0 : index
    %c0_37 = arith.constant 0 : index
    %91 = vector.load %arg10[%c0_35, %c0_36, %c0_37] : memref<2x1x32xf32, #tpu.memory_space<vmem>>, vector<1x1x32xf32>
    %92 = vector.shape_cast %91 : vector<1x1x32xf32> to vector<1x32xf32>
    %c0_38 = arith.constant 0 : index
    %c0_39 = arith.constant 0 : index
    %c0_40 = arith.constant 0 : index
    %93 = vector.load %arg11[%c0_38, %c0_39, %c0_40] : memref<2x1x32xf32, #tpu.memory_space<vmem>>, vector<1x1x32xf32>
    %94 = vector.shape_cast %93 : vector<1x1x32xf32> to vector<1x32xf32>
    %cst_41 = arith.constant dense<0.000000e+00> : vector<16xf32>
    %95 = vector.multi_reduction <add>, %90, %cst_41 [1] : vector<16x32xf32> to vector<16xf32>
    %96 = vector.shape_cast %95 : vector<16xf32> to vector<16x1xf32>
    %cst_42 = arith.constant 3.200000e+01 : f32
    %97 = vector.broadcast %cst_42 : f32 to vector<16x1xf32>
    %98 = arith.divf %96, %97 : vector<16x1xf32>
    %99 = vector.broadcast %98 : vector<16x1xf32> to vector<16x32xf32>
    %100 = arith.subf %90, %99 : vector<16x32xf32>
    %101 = arith.mulf %100, %100 : vector<16x32xf32>
    %cst_43 = arith.constant dense<0.000000e+00> : vector<16xf32>
    %102 = vector.multi_reduction <add>, %101, %cst_43 [1] : vector<16x32xf32> to vector<16xf32>
    %103 = vector.shape_cast %102 : vector<16xf32> to vector<16x1xf32>
    %cst_44 = arith.constant 3.200000e+01 : f32
    %104 = vector.broadcast %cst_44 : f32 to vector<16x1xf32>
    %105 = arith.divf %103, %104 : vector<16x1xf32>
    %106 = vector.broadcast %98 : vector<16x1xf32> to vector<16x32xf32>
    %107 = arith.subf %90, %106 : vector<16x32xf32>
    %cst_45 = arith.constant 9.99999974E-6 : f32
    %108 = vector.broadcast %cst_45 : f32 to vector<16x1xf32>
    %109 = arith.addf %105, %108 : vector<16x1xf32>
    %110 = math.rsqrt %109 : vector<16x1xf32>
    %111 = vector.broadcast %110 : vector<16x1xf32> to vector<16x32xf32>
    %112 = arith.mulf %107, %111 : vector<16x32xf32>
    %113 = vector.broadcast %92 : vector<1x32xf32> to vector<16x32xf32>
    %114 = arith.mulf %112, %113 : vector<16x32xf32>
    %115 = vector.broadcast %94 : vector<1x32xf32> to vector<16x32xf32>
    %116 = arith.addf %114, %115 : vector<16x32xf32>
    %c0_46 = arith.constant 0 : index
    %c0_47 = arith.constant 0 : index
    %c0_48 = arith.constant 0 : index
    %117 = vector.load %arg6[%c0_46, %c0_47, %c0_48] : memref<2x32x64xf32, #tpu.memory_space<vmem>>, vector<1x32x64xf32>
    %118 = vector.shape_cast %117 : vector<1x32x64xf32> to vector<32x64xf32>
    %cst_49 = arith.constant dense<0.000000e+00> : vector<16x64xf32>
    %119 = tpu.matmul %116, %118, %cst_49 {dimension_numbers = #tpu.dot_dimension_numbers<[1], [0], [0], [1], [0, 0, 1, 1], [], []>} : vector<16x32xf32>, vector<32x64xf32>, vector<16x64xf32> -> vector<16x64xf32>
    %c0_50 = arith.constant 0 : index
    %c0_51 = arith.constant 0 : index
    %c0_52 = arith.constant 0 : index
    %120 = vector.load %arg7[%c0_50, %c0_51, %c0_52] : memref<2x1x64xf32, #tpu.memory_space<vmem>>, vector<1x1x64xf32>
    %121 = vector.shape_cast %120 : vector<1x1x64xf32> to vector<1x64xf32>
    %122 = vector.broadcast %121 : vector<1x64xf32> to vector<16x64xf32>
    %123 = arith.addf %119, %122 : vector<16x64xf32>
    %cst_53 = arith.constant 0.000000e+00 : f32
    %124 = vector.broadcast %cst_53 : f32 to vector<16x64xf32>
    %125 = arith.maximumf %123, %124 : vector<16x64xf32>
    %c0_54 = arith.constant 0 : index
    %c0_55 = arith.constant 0 : index
    %c0_56 = arith.constant 0 : index
    %126 = vector.load %arg8[%c0_54, %c0_55, %c0_56] : memref<2x64x32xf32, #tpu.memory_space<vmem>>, vector<1x64x32xf32>
    %127 = vector.shape_cast %126 : vector<1x64x32xf32> to vector<64x32xf32>
    %cst_57 = arith.constant dense<0.000000e+00> : vector<16x32xf32>
    %128 = tpu.matmul %125, %127, %cst_57 {dimension_numbers = #tpu.dot_dimension_numbers<[1], [0], [0], [1], [0, 0, 1, 1], [], []>} : vector<16x64xf32>, vector<64x32xf32>, vector<16x32xf32> -> vector<16x32xf32>
    %c0_58 = arith.constant 0 : index
    %c0_59 = arith.constant 0 : index
    %c0_60 = arith.constant 0 : index
    %129 = vector.load %arg9[%c0_58, %c0_59, %c0_60] : memref<2x1x32xf32, #tpu.memory_space<vmem>>, vector<1x1x32xf32>
    %130 = vector.shape_cast %129 : vector<1x1x32xf32> to vector<1x32xf32>
    %131 = vector.broadcast %130 : vector<1x32xf32> to vector<16x32xf32>
    %132 = arith.addf %128, %131 : vector<16x32xf32>
    %133 = arith.addf %116, %132 : vector<16x32xf32>
    %c0_61 = arith.constant 0 : index
    %c0_62 = arith.constant 0 : index
    %c0_63 = arith.constant 0 : index
    %134 = vector.load %arg12[%c0_61, %c0_62, %c0_63] : memref<2x1x32xf32, #tpu.memory_space<vmem>>, vector<1x1x32xf32>
    %135 = vector.shape_cast %134 : vector<1x1x32xf32> to vector<1x32xf32>
    %c0_64 = arith.constant 0 : index
    %c0_65 = arith.constant 0 : index
    %c0_66 = arith.constant 0 : index
    %136 = vector.load %arg13[%c0_64, %c0_65, %c0_66] : memref<2x1x32xf32, #tpu.memory_space<vmem>>, vector<1x1x32xf32>
    %137 = vector.shape_cast %136 : vector<1x1x32xf32> to vector<1x32xf32>
    %cst_67 = arith.constant dense<0.000000e+00> : vector<16xf32>
    %138 = vector.multi_reduction <add>, %133, %cst_67 [1] : vector<16x32xf32> to vector<16xf32>
    %139 = vector.shape_cast %138 : vector<16xf32> to vector<16x1xf32>
    %cst_68 = arith.constant 3.200000e+01 : f32
    %140 = vector.broadcast %cst_68 : f32 to vector<16x1xf32>
    %141 = arith.divf %139, %140 : vector<16x1xf32>
    %142 = vector.broadcast %141 : vector<16x1xf32> to vector<16x32xf32>
    %143 = arith.subf %133, %142 : vector<16x32xf32>
    %144 = arith.mulf %143, %143 : vector<16x32xf32>
    %cst_69 = arith.constant dense<0.000000e+00> : vector<16xf32>
    %145 = vector.multi_reduction <add>, %144, %cst_69 [1] : vector<16x32xf32> to vector<16xf32>
    %146 = vector.shape_cast %145 : vector<16xf32> to vector<16x1xf32>
    %cst_70 = arith.constant 3.200000e+01 : f32
    %147 = vector.broadcast %cst_70 : f32 to vector<16x1xf32>
    %148 = arith.divf %146, %147 : vector<16x1xf32>
    %149 = vector.broadcast %141 : vector<16x1xf32> to vector<16x32xf32>
    %150 = arith.subf %133, %149 : vector<16x32xf32>
    %cst_71 = arith.constant 9.99999974E-6 : f32
    %151 = vector.broadcast %cst_71 : f32 to vector<16x1xf32>
    %152 = arith.addf %148, %151 : vector<16x1xf32>
    %153 = math.rsqrt %152 : vector<16x1xf32>
    %154 = vector.broadcast %153 : vector<16x1xf32> to vector<16x32xf32>
    %155 = arith.mulf %150, %154 : vector<16x32xf32>
    %156 = vector.broadcast %135 : vector<1x32xf32> to vector<16x32xf32>
    %157 = arith.mulf %155, %156 : vector<16x32xf32>
    %158 = vector.broadcast %137 : vector<1x32xf32> to vector<16x32xf32>
    %159 = arith.addf %157, %158 : vector<16x32xf32>
    %c1 = arith.constant 1 : index
    %c0_72 = arith.constant 0 : index
    %c0_73 = arith.constant 0 : index
    %160 = vector.load %arg2[%c1, %c0_72, %c0_73] : memref<2x32x96xf32, #tpu.memory_space<vmem>>, vector<1x32x96xf32>
    %161 = vector.shape_cast %160 : vector<1x32x96xf32> to vector<32x96xf32>
    %cst_74 = arith.constant dense<0.000000e+00> : vector<16x96xf32>
    %162 = tpu.matmul %159, %161, %cst_74 {dimension_numbers = #tpu.dot_dimension_numbers<[1], [0], [0], [1], [0, 0, 1, 1], [], []>} : vector<16x32xf32>, vector<32x96xf32>, vector<16x96xf32> -> vector<16x96xf32>
    %c1_75 = arith.constant 1 : index
    %c0_76 = arith.constant 0 : index
    %c0_77 = arith.constant 0 : index
    %163 = vector.load %arg3[%c1_75, %c0_76, %c0_77] : memref<2x1x96xf32, #tpu.memory_space<vmem>>, vector<1x1x96xf32>
    %164 = vector.shape_cast %163 : vector<1x1x96xf32> to vector<1x96xf32>
    %165 = vector.broadcast %164 : vector<1x96xf32> to vector<16x96xf32>
    %166 = arith.addf %162, %165 : vector<16x96xf32>
    %c1_78 = arith.constant 1 : index
    %c0_79 = arith.constant 0 : index
    %c0_80 = arith.constant 0 : index
    %167 = vector.load %arg4[%c1_78, %c0_79, %c0_80] : memref<2x32x32xf32, #tpu.memory_space<vmem>>, vector<1x32x32xf32>
    %168 = vector.shape_cast %167 : vector<1x32x32xf32> to vector<32x32xf32>
    %169 = vector.extract_strided_slice %166 {offsets = [0, 0], sizes = [16, 8], strides = [1, 1]} : vector<16x96xf32> to vector<16x8xf32>
    %170 = vector.extract_strided_slice %166 {offsets = [0, 32], sizes = [16, 8], strides = [1, 1]} : vector<16x96xf32> to vector<16x8xf32>
    %171 = vector.extract_strided_slice %166 {offsets = [0, 64], sizes = [16, 8], strides = [1, 1]} : vector<16x96xf32> to vector<16x8xf32>
    %cst_81 = arith.constant dense<0.000000e+00> : vector<16x16xf32>
    %172 = tpu.matmul %169, %170, %cst_81 {dimension_numbers = #tpu.dot_dimension_numbers<[1], [1], [0], [0], [0, 0, 1, 0], [], []>} : vector<16x8xf32>, vector<16x8xf32>, vector<16x16xf32> -> vector<16x16xf32>
    %173 = arith.addf %172, %1 : vector<16x16xf32>
    %cst_82 = arith.constant dense<0xFF800000> : vector<16xf32>
    %174 = vector.multi_reduction <maximumf>, %173, %cst_82 [1] : vector<16x16xf32> to vector<16xf32>
    %175 = vector.shape_cast %174 : vector<16xf32> to vector<16x1xf32>
    %176 = vector.broadcast %175 : vector<16x1xf32> to vector<16x16xf32>
    %177 = arith.subf %173, %176 : vector<16x16xf32>
    %178 = math.exp %177 : vector<16x16xf32>
    %cst_83 = arith.constant dense<0.000000e+00> : vector<16xf32>
    %179 = vector.multi_reduction <add>, %178, %cst_83 [1] : vector<16x16xf32> to vector<16xf32>
    %180 = vector.shape_cast %179 : vector<16xf32> to vector<16x1xf32>
    %181 = tpu.reciprocal %180 : vector<16x1xf32> -> vector<16x1xf32>
    %182 = vector.broadcast %181 : vector<16x1xf32> to vector<16x16xf32>
    %183 = arith.mulf %178, %182 : vector<16x16xf32>
    %cst_84 = arith.constant dense<0.000000e+00> : vector<16x8xf32>
    %184 = tpu.matmul %183, %171, %cst_84 {dimension_numbers = #tpu.dot_dimension_numbers<[1], [0], [0], [1], [0, 0, 1, 1], [], []>} : vector<16x16xf32>, vector<16x8xf32>, vector<16x8xf32> -> vector<16x8xf32>
    %185 = vector.extract_strided_slice %168 {offsets = [0, 0], sizes = [8, 32], strides = [1, 1]} : vector<32x32xf32> to vector<8x32xf32>
    %cst_85 = arith.constant dense<0.000000e+00> : vector<16x32xf32>
    %186 = tpu.matmul %184, %185, %cst_85 {dimension_numbers = #tpu.dot_dimension_numbers<[1], [0], [0], [1], [0, 0, 1, 1], [], []>} : vector<16x8xf32>, vector<8x32xf32>, vector<16x32xf32> -> vector<16x32xf32>
    %187 = vector.extract_strided_slice %166 {offsets = [0, 8], sizes = [16, 8], strides = [1, 1]} : vector<16x96xf32> to vector<16x8xf32>
    %188 = vector.extract_strided_slice %166 {offsets = [0, 40], sizes = [16, 8], strides = [1, 1]} : vector<16x96xf32> to vector<16x8xf32>
    %189 = vector.extract_strided_slice %166 {offsets = [0, 72], sizes = [16, 8], strides = [1, 1]} : vector<16x96xf32> to vector<16x8xf32>
    %cst_86 = arith.constant dense<0.000000e+00> : vector<16x16xf32>
    %190 = tpu.matmul %187, %188, %cst_86 {dimension_numbers = #tpu.dot_dimension_numbers<[1], [1], [0], [0], [0, 0, 1, 0], [], []>} : vector<16x8xf32>, vector<16x8xf32>, vector<16x16xf32> -> vector<16x16xf32>
    %191 = arith.addf %190, %1 : vector<16x16xf32>
    %cst_87 = arith.constant dense<0xFF800000> : vector<16xf32>
    %192 = vector.multi_reduction <maximumf>, %191, %cst_87 [1] : vector<16x16xf32> to vector<16xf32>
    %193 = vector.shape_cast %192 : vector<16xf32> to vector<16x1xf32>
    %194 = vector.broadcast %193 : vector<16x1xf32> to vector<16x16xf32>
    %195 = arith.subf %191, %194 : vector<16x16xf32>
    %196 = math.exp %195 : vector<16x16xf32>
    %cst_88 = arith.constant dense<0.000000e+00> : vector<16xf32>
    %197 = vector.multi_reduction <add>, %196, %cst_88 [1] : vector<16x16xf32> to vector<16xf32>
    %198 = vector.shape_cast %197 : vector<16xf32> to vector<16x1xf32>
    %199 = tpu.reciprocal %198 : vector<16x1xf32> -> vector<16x1xf32>
    %200 = vector.broadcast %199 : vector<16x1xf32> to vector<16x16xf32>
    %201 = arith.mulf %196, %200 : vector<16x16xf32>
    %cst_89 = arith.constant dense<0.000000e+00> : vector<16x8xf32>
    %202 = tpu.matmul %201, %189, %cst_89 {dimension_numbers = #tpu.dot_dimension_numbers<[1], [0], [0], [1], [0, 0, 1, 1], [], []>} : vector<16x16xf32>, vector<16x8xf32>, vector<16x8xf32> -> vector<16x8xf32>
    %203 = vector.extract_strided_slice %168 {offsets = [8, 0], sizes = [8, 32], strides = [1, 1]} : vector<32x32xf32> to vector<8x32xf32>
    %cst_90 = arith.constant dense<0.000000e+00> : vector<16x32xf32>
    %204 = tpu.matmul %202, %203, %cst_90 {dimension_numbers = #tpu.dot_dimension_numbers<[1], [0], [0], [1], [0, 0, 1, 1], [], []>} : vector<16x8xf32>, vector<8x32xf32>, vector<16x32xf32> -> vector<16x32xf32>
    %205 = arith.addf %186, %204 : vector<16x32xf32>
    %206 = vector.extract_strided_slice %166 {offsets = [0, 16], sizes = [16, 8], strides = [1, 1]} : vector<16x96xf32> to vector<16x8xf32>
    %207 = vector.extract_strided_slice %166 {offsets = [0, 48], sizes = [16, 8], strides = [1, 1]} : vector<16x96xf32> to vector<16x8xf32>
    %208 = vector.extract_strided_slice %166 {offsets = [0, 80], sizes = [16, 8], strides = [1, 1]} : vector<16x96xf32> to vector<16x8xf32>
    %cst_91 = arith.constant dense<0.000000e+00> : vector<16x16xf32>
    %209 = tpu.matmul %206, %207, %cst_91 {dimension_numbers = #tpu.dot_dimension_numbers<[1], [1], [0], [0], [0, 0, 1, 0], [], []>} : vector<16x8xf32>, vector<16x8xf32>, vector<16x16xf32> -> vector<16x16xf32>
    %210 = arith.addf %209, %1 : vector<16x16xf32>
    %cst_92 = arith.constant dense<0xFF800000> : vector<16xf32>
    %211 = vector.multi_reduction <maximumf>, %210, %cst_92 [1] : vector<16x16xf32> to vector<16xf32>
    %212 = vector.shape_cast %211 : vector<16xf32> to vector<16x1xf32>
    %213 = vector.broadcast %212 : vector<16x1xf32> to vector<16x16xf32>
    %214 = arith.subf %210, %213 : vector<16x16xf32>
    %215 = math.exp %214 : vector<16x16xf32>
    %cst_93 = arith.constant dense<0.000000e+00> : vector<16xf32>
    %216 = vector.multi_reduction <add>, %215, %cst_93 [1] : vector<16x16xf32> to vector<16xf32>
    %217 = vector.shape_cast %216 : vector<16xf32> to vector<16x1xf32>
    %218 = tpu.reciprocal %217 : vector<16x1xf32> -> vector<16x1xf32>
    %219 = vector.broadcast %218 : vector<16x1xf32> to vector<16x16xf32>
    %220 = arith.mulf %215, %219 : vector<16x16xf32>
    %cst_94 = arith.constant dense<0.000000e+00> : vector<16x8xf32>
    %221 = tpu.matmul %220, %208, %cst_94 {dimension_numbers = #tpu.dot_dimension_numbers<[1], [0], [0], [1], [0, 0, 1, 1], [], []>} : vector<16x16xf32>, vector<16x8xf32>, vector<16x8xf32> -> vector<16x8xf32>
    %222 = vector.extract_strided_slice %168 {offsets = [16, 0], sizes = [8, 32], strides = [1, 1]} : vector<32x32xf32> to vector<8x32xf32>
    %cst_95 = arith.constant dense<0.000000e+00> : vector<16x32xf32>
    %223 = tpu.matmul %221, %222, %cst_95 {dimension_numbers = #tpu.dot_dimension_numbers<[1], [0], [0], [1], [0, 0, 1, 1], [], []>} : vector<16x8xf32>, vector<8x32xf32>, vector<16x32xf32> -> vector<16x32xf32>
    %224 = arith.addf %205, %223 : vector<16x32xf32>
    %225 = vector.extract_strided_slice %166 {offsets = [0, 24], sizes = [16, 8], strides = [1, 1]} : vector<16x96xf32> to vector<16x8xf32>
    %226 = vector.extract_strided_slice %166 {offsets = [0, 56], sizes = [16, 8], strides = [1, 1]} : vector<16x96xf32> to vector<16x8xf32>
    %227 = vector.extract_strided_slice %166 {offsets = [0, 88], sizes = [16, 8], strides = [1, 1]} : vector<16x96xf32> to vector<16x8xf32>
    %cst_96 = arith.constant dense<0.000000e+00> : vector<16x16xf32>
    %228 = tpu.matmul %225, %226, %cst_96 {dimension_numbers = #tpu.dot_dimension_numbers<[1], [1], [0], [0], [0, 0, 1, 0], [], []>} : vector<16x8xf32>, vector<16x8xf32>, vector<16x16xf32> -> vector<16x16xf32>
    %229 = arith.addf %228, %1 : vector<16x16xf32>
    %cst_97 = arith.constant dense<0xFF800000> : vector<16xf32>
    %230 = vector.multi_reduction <maximumf>, %229, %cst_97 [1] : vector<16x16xf32> to vector<16xf32>
    %231 = vector.shape_cast %230 : vector<16xf32> to vector<16x1xf32>
    %232 = vector.broadcast %231 : vector<16x1xf32> to vector<16x16xf32>
    %233 = arith.subf %229, %232 : vector<16x16xf32>
    %234 = math.exp %233 : vector<16x16xf32>
    %cst_98 = arith.constant dense<0.000000e+00> : vector<16xf32>
    %235 = vector.multi_reduction <add>, %234, %cst_98 [1] : vector<16x16xf32> to vector<16xf32>
    %236 = vector.shape_cast %235 : vector<16xf32> to vector<16x1xf32>
    %237 = tpu.reciprocal %236 : vector<16x1xf32> -> vector<16x1xf32>
    %238 = vector.broadcast %237 : vector<16x1xf32> to vector<16x16xf32>
    %239 = arith.mulf %234, %238 : vector<16x16xf32>
    %cst_99 = arith.constant dense<0.000000e+00> : vector<16x8xf32>
    %240 = tpu.matmul %239, %227, %cst_99 {dimension_numbers = #tpu.dot_dimension_numbers<[1], [0], [0], [1], [0, 0, 1, 1], [], []>} : vector<16x16xf32>, vector<16x8xf32>, vector<16x8xf32> -> vector<16x8xf32>
    %241 = vector.extract_strided_slice %168 {offsets = [24, 0], sizes = [8, 32], strides = [1, 1]} : vector<32x32xf32> to vector<8x32xf32>
    %cst_100 = arith.constant dense<0.000000e+00> : vector<16x32xf32>
    %242 = tpu.matmul %240, %241, %cst_100 {dimension_numbers = #tpu.dot_dimension_numbers<[1], [0], [0], [1], [0, 0, 1, 1], [], []>} : vector<16x8xf32>, vector<8x32xf32>, vector<16x32xf32> -> vector<16x32xf32>
    %243 = arith.addf %224, %242 : vector<16x32xf32>
    %c1_101 = arith.constant 1 : index
    %c0_102 = arith.constant 0 : index
    %c0_103 = arith.constant 0 : index
    %244 = vector.load %arg5[%c1_101, %c0_102, %c0_103] : memref<2x1x32xf32, #tpu.memory_space<vmem>>, vector<1x1x32xf32>
    %245 = vector.shape_cast %244 : vector<1x1x32xf32> to vector<1x32xf32>
    %246 = vector.broadcast %245 : vector<1x32xf32> to vector<16x32xf32>
    %247 = arith.addf %243, %246 : vector<16x32xf32>
    %248 = arith.addf %159, %247 : vector<16x32xf32>
    %c1_104 = arith.constant 1 : index
    %c0_105 = arith.constant 0 : index
    %c0_106 = arith.constant 0 : index
    %249 = vector.load %arg10[%c1_104, %c0_105, %c0_106] : memref<2x1x32xf32, #tpu.memory_space<vmem>>, vector<1x1x32xf32>
    %250 = vector.shape_cast %249 : vector<1x1x32xf32> to vector<1x32xf32>
    %c1_107 = arith.constant 1 : index
    %c0_108 = arith.constant 0 : index
    %c0_109 = arith.constant 0 : index
    %251 = vector.load %arg11[%c1_107, %c0_108, %c0_109] : memref<2x1x32xf32, #tpu.memory_space<vmem>>, vector<1x1x32xf32>
    %252 = vector.shape_cast %251 : vector<1x1x32xf32> to vector<1x32xf32>
    %cst_110 = arith.constant dense<0.000000e+00> : vector<16xf32>
    %253 = vector.multi_reduction <add>, %248, %cst_110 [1] : vector<16x32xf32> to vector<16xf32>
    %254 = vector.shape_cast %253 : vector<16xf32> to vector<16x1xf32>
    %cst_111 = arith.constant 3.200000e+01 : f32
    %255 = vector.broadcast %cst_111 : f32 to vector<16x1xf32>
    %256 = arith.divf %254, %255 : vector<16x1xf32>
    %257 = vector.broadcast %256 : vector<16x1xf32> to vector<16x32xf32>
    %258 = arith.subf %248, %257 : vector<16x32xf32>
    %259 = arith.mulf %258, %258 : vector<16x32xf32>
    %cst_112 = arith.constant dense<0.000000e+00> : vector<16xf32>
    %260 = vector.multi_reduction <add>, %259, %cst_112 [1] : vector<16x32xf32> to vector<16xf32>
    %261 = vector.shape_cast %260 : vector<16xf32> to vector<16x1xf32>
    %cst_113 = arith.constant 3.200000e+01 : f32
    %262 = vector.broadcast %cst_113 : f32 to vector<16x1xf32>
    %263 = arith.divf %261, %262 : vector<16x1xf32>
    %264 = vector.broadcast %256 : vector<16x1xf32> to vector<16x32xf32>
    %265 = arith.subf %248, %264 : vector<16x32xf32>
    %cst_114 = arith.constant 9.99999974E-6 : f32
    %266 = vector.broadcast %cst_114 : f32 to vector<16x1xf32>
    %267 = arith.addf %263, %266 : vector<16x1xf32>
    %268 = math.rsqrt %267 : vector<16x1xf32>
    %269 = vector.broadcast %268 : vector<16x1xf32> to vector<16x32xf32>
    %270 = arith.mulf %265, %269 : vector<16x32xf32>
    %271 = vector.broadcast %250 : vector<1x32xf32> to vector<16x32xf32>
    %272 = arith.mulf %270, %271 : vector<16x32xf32>
    %273 = vector.broadcast %252 : vector<1x32xf32> to vector<16x32xf32>
    %274 = arith.addf %272, %273 : vector<16x32xf32>
    %c1_115 = arith.constant 1 : index
    %c0_116 = arith.constant 0 : index
    %c0_117 = arith.constant 0 : index
    %275 = vector.load %arg6[%c1_115, %c0_116, %c0_117] : memref<2x32x64xf32, #tpu.memory_space<vmem>>, vector<1x32x64xf32>
    %276 = vector.shape_cast %275 : vector<1x32x64xf32> to vector<32x64xf32>
    %cst_118 = arith.constant dense<0.000000e+00> : vector<16x64xf32>
    %277 = tpu.matmul %274, %276, %cst_118 {dimension_numbers = #tpu.dot_dimension_numbers<[1], [0], [0], [1], [0, 0, 1, 1], [], []>} : vector<16x32xf32>, vector<32x64xf32>, vector<16x64xf32> -> vector<16x64xf32>
    %c1_119 = arith.constant 1 : index
    %c0_120 = arith.constant 0 : index
    %c0_121 = arith.constant 0 : index
    %278 = vector.load %arg7[%c1_119, %c0_120, %c0_121] : memref<2x1x64xf32, #tpu.memory_space<vmem>>, vector<1x1x64xf32>
    %279 = vector.shape_cast %278 : vector<1x1x64xf32> to vector<1x64xf32>
    %280 = vector.broadcast %279 : vector<1x64xf32> to vector<16x64xf32>
    %281 = arith.addf %277, %280 : vector<16x64xf32>
    %cst_122 = arith.constant 0.000000e+00 : f32
    %282 = vector.broadcast %cst_122 : f32 to vector<16x64xf32>
    %283 = arith.maximumf %281, %282 : vector<16x64xf32>
    %c1_123 = arith.constant 1 : index
    %c0_124 = arith.constant 0 : index
    %c0_125 = arith.constant 0 : index
    %284 = vector.load %arg8[%c1_123, %c0_124, %c0_125] : memref<2x64x32xf32, #tpu.memory_space<vmem>>, vector<1x64x32xf32>
    %285 = vector.shape_cast %284 : vector<1x64x32xf32> to vector<64x32xf32>
    %cst_126 = arith.constant dense<0.000000e+00> : vector<16x32xf32>
    %286 = tpu.matmul %283, %285, %cst_126 {dimension_numbers = #tpu.dot_dimension_numbers<[1], [0], [0], [1], [0, 0, 1, 1], [], []>} : vector<16x64xf32>, vector<64x32xf32>, vector<16x32xf32> -> vector<16x32xf32>
    %c1_127 = arith.constant 1 : index
    %c0_128 = arith.constant 0 : index
    %c0_129 = arith.constant 0 : index
    %287 = vector.load %arg9[%c1_127, %c0_128, %c0_129] : memref<2x1x32xf32, #tpu.memory_space<vmem>>, vector<1x1x32xf32>
    %288 = vector.shape_cast %287 : vector<1x1x32xf32> to vector<1x32xf32>
    %289 = vector.broadcast %288 : vector<1x32xf32> to vector<16x32xf32>
    %290 = arith.addf %286, %289 : vector<16x32xf32>
    %291 = arith.addf %274, %290 : vector<16x32xf32>
    %c1_130 = arith.constant 1 : index
    %c0_131 = arith.constant 0 : index
    %c0_132 = arith.constant 0 : index
    %292 = vector.load %arg12[%c1_130, %c0_131, %c0_132] : memref<2x1x32xf32, #tpu.memory_space<vmem>>, vector<1x1x32xf32>
    %293 = vector.shape_cast %292 : vector<1x1x32xf32> to vector<1x32xf32>
    %c1_133 = arith.constant 1 : index
    %c0_134 = arith.constant 0 : index
    %c0_135 = arith.constant 0 : index
    %294 = vector.load %arg13[%c1_133, %c0_134, %c0_135] : memref<2x1x32xf32, #tpu.memory_space<vmem>>, vector<1x1x32xf32>
    %295 = vector.shape_cast %294 : vector<1x1x32xf32> to vector<1x32xf32>
    %cst_136 = arith.constant dense<0.000000e+00> : vector<16xf32>
    %296 = vector.multi_reduction <add>, %291, %cst_136 [1] : vector<16x32xf32> to vector<16xf32>
    %297 = vector.shape_cast %296 : vector<16xf32> to vector<16x1xf32>
    %cst_137 = arith.constant 3.200000e+01 : f32
    %298 = vector.broadcast %cst_137 : f32 to vector<16x1xf32>
    %299 = arith.divf %297, %298 : vector<16x1xf32>
    %300 = vector.broadcast %299 : vector<16x1xf32> to vector<16x32xf32>
    %301 = arith.subf %291, %300 : vector<16x32xf32>
    %302 = arith.mulf %301, %301 : vector<16x32xf32>
    %cst_138 = arith.constant dense<0.000000e+00> : vector<16xf32>
    %303 = vector.multi_reduction <add>, %302, %cst_138 [1] : vector<16x32xf32> to vector<16xf32>
    %304 = vector.shape_cast %303 : vector<16xf32> to vector<16x1xf32>
    %cst_139 = arith.constant 3.200000e+01 : f32
    %305 = vector.broadcast %cst_139 : f32 to vector<16x1xf32>
    %306 = arith.divf %304, %305 : vector<16x1xf32>
    %307 = vector.broadcast %299 : vector<16x1xf32> to vector<16x32xf32>
    %308 = arith.subf %291, %307 : vector<16x32xf32>
    %cst_140 = arith.constant 9.99999974E-6 : f32
    %309 = vector.broadcast %cst_140 : f32 to vector<16x1xf32>
    %310 = arith.addf %306, %309 : vector<16x1xf32>
    %311 = math.rsqrt %310 : vector<16x1xf32>
    %312 = vector.broadcast %311 : vector<16x1xf32> to vector<16x32xf32>
    %313 = arith.mulf %308, %312 : vector<16x32xf32>
    %314 = vector.broadcast %293 : vector<1x32xf32> to vector<16x32xf32>
    %315 = arith.mulf %313, %314 : vector<16x32xf32>
    %316 = vector.broadcast %295 : vector<1x32xf32> to vector<16x32xf32>
    %317 = arith.addf %315, %316 : vector<16x32xf32>
    %c0_141 = arith.constant 0 : index
    %c0_142 = arith.constant 0 : index
    %318 = vector.load %arg14[%c0_141, %c0_142] : memref<1x32xf32, #tpu.memory_space<vmem>>, vector<1x32xf32>
    %c0_143 = arith.constant 0 : index
    %c0_144 = arith.constant 0 : index
    %319 = vector.load %arg15[%c0_143, %c0_144] : memref<1x32xf32, #tpu.memory_space<vmem>>, vector<1x32xf32>
    %cst_145 = arith.constant dense<0.000000e+00> : vector<16xf32>
    %320 = vector.multi_reduction <add>, %317, %cst_145 [1] : vector<16x32xf32> to vector<16xf32>
    %321 = vector.shape_cast %320 : vector<16xf32> to vector<16x1xf32>
    %cst_146 = arith.constant 3.200000e+01 : f32
    %322 = vector.broadcast %cst_146 : f32 to vector<16x1xf32>
    %323 = arith.divf %321, %322 : vector<16x1xf32>
    %324 = vector.broadcast %323 : vector<16x1xf32> to vector<16x32xf32>
    %325 = arith.subf %317, %324 : vector<16x32xf32>
    %326 = arith.mulf %325, %325 : vector<16x32xf32>
    %cst_147 = arith.constant dense<0.000000e+00> : vector<16xf32>
    %327 = vector.multi_reduction <add>, %326, %cst_147 [1] : vector<16x32xf32> to vector<16xf32>
    %328 = vector.shape_cast %327 : vector<16xf32> to vector<16x1xf32>
    %cst_148 = arith.constant 3.200000e+01 : f32
    %329 = vector.broadcast %cst_148 : f32 to vector<16x1xf32>
    %330 = arith.divf %328, %329 : vector<16x1xf32>
    %331 = vector.broadcast %323 : vector<16x1xf32> to vector<16x32xf32>
    %332 = arith.subf %317, %331 : vector<16x32xf32>
    %cst_149 = arith.constant 9.99999974E-6 : f32
    %333 = vector.broadcast %cst_149 : f32 to vector<16x1xf32>
    %334 = arith.addf %330, %333 : vector<16x1xf32>
    %335 = math.rsqrt %334 : vector<16x1xf32>
    %336 = vector.broadcast %335 : vector<16x1xf32> to vector<16x32xf32>
    %337 = arith.mulf %332, %336 : vector<16x32xf32>
    %338 = vector.broadcast %318 : vector<1x32xf32> to vector<16x32xf32>
    %339 = arith.mulf %337, %338 : vector<16x32xf32>
    %340 = vector.broadcast %319 : vector<1x32xf32> to vector<16x32xf32>
    %341 = arith.addf %339, %340 : vector<16x32xf32>
    %c0_150 = arith.constant 0 : index
    %c0_151 = arith.constant 0 : index
    %342 = vector.load %arg16[%c0_150, %c0_151] : memref<16x32xf32, #tpu.memory_space<vmem>>, vector<16x32xf32>
    tpu.vector_store %arg16[%c0_150, %c0_151], %341 {strides = array<i32>} : memref<16x32xf32, #tpu.memory_space<vmem>>, vector<16x32xf32>,
    return
  }
}

</mosaic_0001>

<bundles_post_ra>
// kernel: transformer_forward.1
= control target key start
LH: loop header
LB: loop body
LE: loop exit
PB: predicated region body
PF: predicated region fallthrough
CT: control target
= control target key end

     0   :  { %s3057_s0 = inlined_call_operand.hbm [shape: f32[16,32], index: 0, kind: input, shape index: {}]   ;;  %s3058_s1 = inlined_call_operand.hbm [shape: f32[16,16], index: 1, kind: input, shape index: {}]   ;;  %s3059_s2 = inlined_call_operand.vmem [shape: f32[2,32,96], index: 2, kind: input, shape index: {}]   ;;  %s3060_s3 = inlined_call_operand.vmem [shape: f32[2,1,96], index: 3, kind: input, shape index: {}]   ;;  %s3061_s4 = inlined_call_operand.vmem [shape: f32[2,32,32], index: 4, kind: input, shape index: {}]   ;;  %s3062_s5 = inlined_call_operand.hbm [shape: f32[2,1,32], index: 5, kind: input, shape index: {}]   ;;  %s3063_s6 = inlined_call_operand.vmem [shape: f32[2,32,64], index: 6, kind: input, shape index: {}]   ;;  %s3064_s7 = inlined_call_operand.hbm [shape: f32[2,1,64], index: 7, kind: input, shape index: {}]   ;;  %s3065_s8 = inlined_call_operand.vmem [shape: f32[2,64,32], index: 8, kind: input, shape index: {}]   ;;  %s3066_s9 = inlined_call_operand.hbm [shape: f32[2,1,32], index: 9, kind: input, shape index: {}]   ;;  %s3067_s10 = inlined_call_operand.vmem [shape: f32[2,1,32], index: 10, kind: input, shape index: {}]   ;;  %s3068_s11 = inlined_call_operand.hbm [shape: f32[2,1,32], index: 11, kind: input, shape index: {}]   ;;  %s3069_s12 = inlined_call_operand.vmem [shape: f32[2,1,32], index: 12, kind: input, shape index: {}]   ;;  %s3070_s13 = inlined_call_operand.hbm [shape: f32[2,1,32], index: 13, kind: input, shape index: {}]   ;;  %s3071_s14 = inlined_call_operand.vmem [shape: f32[1,32], index: 14, kind: input, shape index: {}]   ;;  %s3072_s15 = inlined_call_operand.vmem [shape: f32[1,32], index: 15, kind: input, shape index: {}]   ;;  %s3073_s16 = inlined_call_operand.hbm [shape: f32[16,32], index: 16, kind: output, shape index: {}]  }
   0x1   :  { %3074 = sst [smem:[#allocation20_spill]] %s3057_s0 }
   0x2   :  { %21 = vsyncpa [#allocation3], 0 }
   0x3   :  { %22 = vsyncpa [#allocation6], 0 }
   0x4   :  { %23 = vsyncpa [#allocation9], 0 }
   0x5   :  { %24 = vsyncpa [#allocation12], 0 }
   0x6   :  { %25 = vsyncpa [#allocation4], 0  ;;  %s43_s23 = sshll.u32 %s3058_s1, 4  ;;  %s2445_s24 = smov [#allocation5]   ;;  %s44_s23 = int_to_ptr.hbm [resolvable:$true] %s43_s23 }
   0x7   :  { %s45_s25 = sshll.u32 %s2445_s24, 4  ;;  %s2446_s26 = smov 128   ;;  %s46_s25 = int_to_ptr.vmem [resolvable:$true] %s45_s25 }
   0x8   :  { %s2447_s27 = smov 8   ;;  %s77_s30 = sshll.u32 %s3064_s7, 4  ;;  %s78_s30 = int_to_ptr.hbm [resolvable:$true] %s77_s30 }
   0x9   :  { %51 = dma.hbm_to_vmem [thread:$0]  %s44_s23, 256, %s46_s25, [#allocation6], %s2446_s26, %s2446_s26, %s2447_s27  }
   0xa   :  { %s2448_s0 = smov [#allocation8]   ;;  %s107_s1 = sshll.u32 %s3068_s11, 4  ;;  %s108_s1 = int_to_ptr.hbm [resolvable:$true] %s107_s1 }
   0xb   :  { %s79_s17 = sshll.u32 %s2448_s0, 4  ;;  %s2449_s20 = smov 16   ;;  %s80_s17 = int_to_ptr.vmem [resolvable:$true] %s79_s17 }
   0xc   :  { %s2450_s21 = smov 1   ;;  %s3075_s24 = sld [smem:[#allocation20_spill]] }
   0xd   :  { %85 = dma.hbm_to_vmem [thread:$0]  %s78_s30, 32, %s80_s17, [#allocation9], %s2449_s20, %s2449_s20, %s2450_s21  }
   0xe   :  { %s2451_s7 = smov [#allocation11]   ;;  %s2452_s11 = smov [#allocation2]  }
   0xf   :  { %s109_s28 = sshll.u32 %s2451_s7, 4  ;;  %s32_s29 = sshll.u32 %s2452_s11, 4  ;;  %s110_s28 = int_to_ptr.vmem [resolvable:$true] %s109_s28  ;;  %s33_s29 = int_to_ptr.vmem [resolvable:$true] %s32_s29 }
  0x10   :  { %115 = dma.hbm_to_vmem [thread:$0]  %s108_s1, 32, %s110_s28, [#allocation12], %s2449_s20, %s2449_s20, %s2450_s21  }
  0x11   :  { %s62_s19 = sshll.u32 %s3062_s5, 4  ;;  %s92_s22 = sshll.u32 %s3066_s9, 4  ;;  %s63_s19 = int_to_ptr.hbm [resolvable:$true] %s62_s19  ;;  %s93_s22 = int_to_ptr.hbm [resolvable:$true] %s92_s22 }
  0x12   :  { %s30_s25 = sshll.u32 %s3075_s24, 4  ;;  %s2453_s23 = smov [#allocation7]   ;;  %s31_s25 = int_to_ptr.hbm [resolvable:$true] %s30_s25 }
  0x13   :  { %38 = dma.hbm_to_vmem [thread:$0]  %s31_s25, 256, %s33_s29, [#allocation3], %s2446_s26, %s2446_s26, %s2447_s27  }
  0x14   :  { %s64_s24 = sshll.u32 %s2453_s23, 4  ;;  %s2454_s1 = smov [#allocation10]   ;;  %s65_s24 = int_to_ptr.vmem [resolvable:$true] %s64_s24 }
  0x15   :  { %70 = dma.hbm_to_vmem [thread:$0]  %s63_s19, 32, %s65_s24, [#allocation6], %s2449_s20, %s2449_s20, %s2450_s21  }
  0x16   :  { %s94_s5 = sshll.u32 %s2454_s1, 4  ;;  %s122_s11 = sshll.u32 %s3070_s13, 4  ;;  %s95_s5 = int_to_ptr.vmem [resolvable:$true] %s94_s5  ;;  %s123_s11 = int_to_ptr.hbm [resolvable:$true] %s122_s11 }
  0x17   :  { %100 = dma.hbm_to_vmem [thread:$0]  %s93_s22, 32, %s95_s5, [#allocation9], %s2449_s20, %s2449_s20, %s2450_s21  }
  0x18   :  { %s2455_s9 = smov [#allocation13]  }
  0x19   :  { %s124_s25 = sshll.u32 %s2455_s9, 4  ;;  %s125_s25 = int_to_ptr.vmem [resolvable:$true] %s124_s25 }
  0x1a   :  { %130 = dma.hbm_to_vmem [thread:$0]  %s123_s11, 32, %s125_s25, [#allocation12], %s2449_s20, %s2449_s20, %s2450_s21  }
  0x1b   :  { %2435 = dma.done.wait [#allocation3], 256  }
  0x1c   :  { %2436 = vsyncadd [#allocation3], 4294967040 }
  0x1d   :  { %2437 = dma.done.wait [#allocation6], 288  }
  0x1e   :  { %2438 = vsyncadd [#allocation6], 4294967008 }
  0x1f   :  { %2439 = dma.done.wait [#allocation9], 64  }
  0x20   :  { %2440 = vsyncadd [#allocation9], 4294967232 }
  0x21   :  { %2441 = dma.done.wait [#allocation12], 64  }
  0x22   :  { %2442 = vsyncadd [#allocation12], 4294967232  ;;  %v170_v0 = vld [vmem:[%s3059_s2 + $0x18] sm:$0xff]  ;;  %v169_v1 = vld [vmem:[%s3059_s2 + $0x10] sm:$0xff]  ;;  %vm175_vm0 = vcmask 261120   ;;  %s2456_s23 = smov 96  }
  0x23   :  { %194 = vmatpush.msra.mxu0 %v170_v0  ;;  %2067 = vmatpush.msra.mxu1 %v170_v0  ;;  %v168_v2 = vld [vmem:[%s3059_s2 + $0x8] sm:$0xff]  ;;  %v167_v3 = vld [vmem:[%s3059_s2] sm:$0xff]  ;;  %s2457_s24 = smov 64   ;;  %s2458_s1 = smov 120   ;;  %vm215_vm1 = vcmask 64512   ;;  %v2642_v17 = vld [vmem:[#allocation5] sm:$0xff] }
  0x24   :  { %v2608_v4 = vld [vmem:[#allocation2] sm:$0xff]  ;;  %v2610_v5 = vld [vmem:[#allocation2 + $0x8] sm:$0xff]  ;;  %s2459_s5 = smov 80   ;;  %s2460_s7 = smov 72   ;;  %vm247_vm2 = vcmask 130048   ;;  %v2646_v21 = vld [vmem:[#allocation5 + $0x8] sm:$0xff] }
  0x25   :  { %195 = vmatpush.msra.mxu0 %v169_v1  ;;  %2068 = vmatpush.msra.mxu1 %v169_v1  ;;  %v2137_v6 = vld [vmem:[%s3060_s3] ss:$0 sm:$0xff]  ;;  %s2461_s28 = smov 112   ;;  %s2462_s11 = smov 88  }
  0x26   :  { %s2463_s9 = smov 104   ;;  %v205_v36 = vld [vmem:[%s3061_s4] sm:$0xff]  ;;  %s2464_s29 = smov 56  }
  0x27   :  { %196 = vmatpush.msra.mxu0 %v168_v2  ;;  %2069 = vmatpush.msra.mxu1 %v168_v2  ;;  %s2465_s0 = smov 48   ;;  %s2466_s18 = smov 40  }
  0x28   :  { %s1952_s13 = sshll.u32 %s3073_s16, 4  ;;  %s1953_s13 = int_to_ptr.hbm [resolvable:$true] %s1952_s13 }
  0x29   :  { %197 = vmatpush.msra.mxu0 %v167_v3  ;;  %2070 = vmatpush.msra.mxu1 %v167_v3 }
  0x2a   :  { %1968 = vmatmul.msk.f32.vlgmr.msra.gmra.mxu0 %vm175_vm0, %v2608_v4  ;;  %1969 = vmatmul.msk.f32.vlgmr.msra.gmra.mxu1 %vm175_vm0, %v2610_v5 }
  0xa7   :  { %v202_v7 = vpop.f32.mrf.mxu1  ;;  %v199_v9 = vpop.f32.mrf.mxu0 }
  0xa8   :  { %v2619_v8 = vadd.f32 %v2137_v6, %v202_v7  ;;  %v200_v10 = vadd.f32 %v2137_v6, %v199_v9 }
  0xaa   :  { %213 = vrot.lane.b32.xlu0 %v2619_v8, %s2456_s23  ;;  %v2625_v11 = vpack.i.bf16 %v200_v10, %v2619_v8 }
  0xb2   :  { %211 = vrot.lane.b32.xlu0 %v200_v10, %s2456_s23 }
  0xba   :  { %2098 = vrot.lane.b32.xlu0 %v2625_v11, %s2457_s24 }
  0xc2   :  { %331 = vrot.lane.b32.xlu0 %v200_v10, %s2458_s1 }
  0xca   :  { %333 = vrot.lane.b32.xlu0 %v2619_v8, %s2458_s1 }
  0xd2   :  { %517 = vrot.lane.b32.xlu0 %v2619_v8, %s2459_s5 }
  0xda   :  { %668 = vrot.lane.b32.xlu0 %v200_v10, %s2460_s7 }
  0xe2   :  { %513 = vrot.lane.b32.xlu0 %v2619_v8, %s2461_s28 }
 0x11c   :  { %v214_v12 = vpop.permute.xlu0 %213 }
 0x11d   :  { %1970 = vmatpush.xpose.msk.msrb.mxu1 %vm215_vm1, %v214_v12 }
 0x124   :  { %v212_v13 = vpop.permute.xlu0 %211 }
 0x125   :  { %1971 = vmatpush.xpose.msk.msrb.mxu1 %vm215_vm1, %v212_v13 }
 0x128   :  { %1972 = vmatmul.msk.f32.vlgmr.msrb.gmra.mxu1 %vm215_vm1, %v200_v10 }
 0x129   :  { %503 = vmatpush.msra.mxu1 %v205_v36 }
 0x12c   :  { %v2099_v14 = vpop.permute.xlu0 %2098 }
 0x12d   :  { %v2100_v15 = vunpack.i.l.bf16 %v2099_v14  ;;  %v2101_v16 = vunpack.i.h.bf16 %v2099_v14 }
 0x12f   :  { %322 = vmatpush.msra.mxu2 %v2100_v15  ;;  %2071 = vmatpush.msra.mxu3 %v2100_v15 }
 0x130   :  { %1973 = vmatmul.msk.f32.gmra.mxu1 %vm215_vm1, %v2619_v8 }
 0x131   :  { %323 = vmatpush.msra.mxu2 %v2101_v16  ;;  %2072 = vmatpush.msra.mxu3 %v2101_v16 }
 0x134   :  { %v332_v37 = vpop.permute.xlu0 %331 }
 0x13c   :  { %v334_v40 = vpop.permute.xlu0 %333 }
 0x144   :  { %v518_v54 = vpop.permute.xlu0 %517 }
 0x14c   :  { %v669_v2 = vpop.permute.xlu0 %668 }
 0x154   :  { %v514_v7 = vpop.permute.xlu0 %513 }
 0x1a5   :  { %v241_v18 = vpop.f32.mrf.mxu1 }
 0x1a6   :  { %v242_v19 = vadd.f32 %v241_v18, %v2642_v17 }
 0x1a8   :  { %v248_v20 = vsel %vm247_vm2, %v242_v19, -inf }
 0x1a9   :  { %249 = vmax.xlane.f32.xlu1 %v248_v20 }
 0x1ad   :  { %v244_v22 = vpop.f32.mrf.mxu1 }
 0x1ae   :  { %v245_v23 = vadd.f32 %v244_v22, %v2646_v21 }
 0x1b0   :  { %v251_v24 = vsel %vm247_vm2, %v245_v23, -inf }
 0x1b1   :  { %252 = vmax.xlane.f32.xlu1 %v251_v24 }
 0x1ca   :  { %337 = vrot.lane.b32.xlu1 %v2619_v8, %s2462_s11 }
 0x1d2   :  { %515 = vrot.lane.b32.xlu1 %v200_v10, %s2459_s5 }
 0x1da   :  { %664 = vrot.lane.b32.xlu1 %v200_v10, %s2463_s9 }
 0x21c   :  { %v250_v25 = vpop.xlane.xlu1 %249 }
 0x21d   :  { %v254_v26 = vsub.f32 %v242_v19, %v250_v25 }
 0x21f   :  { %v256_v27 = vmul.f32 1.442695, %v254_v26 }
 0x221   :  { %2155 = vpow2.f32 %v256_v27 }
 0x224   :  { %v253_v28 = vpop.xlane.xlu1 %252 }
 0x225   :  { %v255_v29 = vsub.f32 %v245_v23, %v253_v28 }
 0x227   :  { %v2156_v30 = vpop.eup %2155  ;;  %v258_v31 = vmul.f32 1.442695, %v255_v29 }
 0x228   :  { %v260_v32 = vsel %vm247_vm2, %v2156_v30, 0.0 }
 0x229   :  { %2157 = vpow2.f32 %v258_v31  ;;  %261 = vadd.xlane.f32.xlu2 %v260_v32 }
 0x22f   :  { %v2158_v33 = vpop.eup %2157 }
 0x230   :  { %v263_v34 = vsel %vm247_vm2, %v2158_v33, 0.0 }
 0x231   :  { %264 = vadd.xlane.f32.xlu2 %v263_v34 }
 0x23c   :  { %v338_v35 = vpop.permute.xlu1 %337 }
 0x23d   :  { %1976 = vmatpush.xpose.msk.msrb.mxu3 %vm215_vm1, %v338_v35 }
 0x244   :  { %v516_v3 = vpop.permute.xlu1 %515 }
 0x249   :  { %335 = vrot.lane.b32.xlu2 %v200_v10, %s2462_s11 }
 0x251   :  { %670 = vrot.lane.b32.xlu2 %v2619_v8, %s2460_s7 }
 0x259   :  { %511 = vrot.lane.b32.xlu2 %v200_v10, %s2461_s28  ;;  %v665_v10 = vpop.permute.xlu1 %664 }
 0x261   :  { %666 = vrot.lane.b32.xlu2 %v2619_v8, %s2463_s9 }
 0x29c   :  { %v262_v38 = vpop.xlane.xlu2 %261 }
 0x29d   :  { %2159 = vrcp.f32 %v262_v38  ;;  %v277_v44 = vand.u32 2147483648, %v262_v38  ;;  %v275_v46 = vand.u32 2147483647, %v262_v38  ;;  %vm271_vm4 = vweird.f32 %v262_v38 }
 0x29f   :  { %v278_v49 = vor.u32 1.1754944e-38, %v277_v44  ;;  %vm276_vm6 = vcmp.eq.f32.partialorder %v275_v46, 8.507059e+37 }
 0x2a3   :  { %v2160_v39 = vpop.eup %2159 }
 0x2a4   :  { %v267_v41 = vmul.f32 %v2160_v39, %v262_v38  ;;  %v265_v42 = vpop.xlane.xlu2 %264  ;;  %vm272_vm3 = vweird.f32 %v2160_v39 }
 0x2a5   :  { %2161 = vrcp.f32 %v265_v42  ;;  %vm273_vm5 = vmor %vm271_vm4, %vm272_vm3  ;;  %v291_v57 = vand.u32 2147483648, %v265_v42  ;;  %v289_v59 = vand.u32 2147483647, %v265_v42  ;;  %vm285_vm8 = vweird.f32 %v265_v42 }
 0x2a6   :  { %v268_v43 = vsub.f32 1.0, %v267_v41 }
 0x2a7   :  { %v292_v61 = vor.u32 1.1754944e-38, %v291_v57  ;;  %vm290_vm10 = vcmp.eq.f32.partialorder %v289_v59, 8.507059e+37 }
 0x2a8   :  { %v269_v45 = vmul.f32 %v2160_v39, %v268_v43 }
 0x2aa   :  { %v270_v47 = vadd.f32 %v2160_v39, %v269_v45 }
 0x2ab   :  { %v2162_v48 = vpop.eup %2161 }
 0x2ac   :  { %v281_v50 = vmul.f32 %v2162_v48, %v265_v42  ;;  %v336_v51 = vpop.permute.xlu2 %335  ;;  %v274_v52 = vsel %vm273_vm5, %v2160_v39, %v270_v47  ;;  %vm286_vm7 = vweird.f32 %v2162_v48 }
 0x2ad   :  { %1977 = vmatpush.xpose.msk.msrb.mxu3 %vm215_vm1, %v336_v51  ;;  %v279_v53 = vsel %vm276_vm6, %v278_v49, %v274_v52  ;;  %vm287_vm9 = vmor %vm285_vm8, %vm286_vm7 }
 0x2ae   :  { %v282_v55 = vsub.f32 1.0, %v281_v50  ;;  %v294_v56 = vmul.f32 %v2156_v30, %v279_v53 }
 0x2b0   :  { %v283_v58 = vmul.f32 %v2162_v48, %v282_v55  ;;  %1974 = vmatmul.msk.f32.vlgmr.msra.gmra.mxu2 %vm247_vm2, %v294_v56 }
 0x2b2   :  { %v284_v60 = vadd.f32 %v2162_v48, %v283_v58 }
 0x2b4   :  { %v671_v62 = vpop.permute.xlu2 %670  ;;  %v288_v63 = vsel %vm287_vm9, %v2162_v48, %v284_v60 }
 0x2b5   :  { %1994 = vmatpush.xpose.msk.msrb.mxu1 %vm215_vm1, %v671_v62  ;;  %v293_v0 = vsel %vm290_vm10, %v292_v61, %v288_v63 }
 0x2b6   :  { %v295_v1 = vmul.f32 %v2158_v33, %v293_v0 }
 0x2b8   :  { %1975 = vmatmul.msk.f32.vlgmr.msra.gmra.mxu3 %vm247_vm2, %v295_v1 }
 0x2b9   :  { %1986 = vmatpush.xpose.msk.msra.mxu3 %vm215_vm1, %v518_v54  ;;  %1995 = vmatpush.xpose.msk.msrb.mxu1 %vm215_vm1, %v669_v2 }
 0x2bc   :  { %v512_v6 = vpop.permute.xlu2 %511 }
 0x2bd   :  { %1987 = vmatpush.xpose.msk.msra.mxu3 %vm215_vm1, %v516_v3 }
 0x2c0   :  { %1978 = vmatmul.msk.f32.vlgmr.msrb.gmra.mxu3 %vm215_vm1, %v332_v37 }
 0x2c4   :  { %v667_v15 = vpop.permute.xlu2 %666 }
 0x2c8   :  { %1979 = vmatmul.msk.f32.gmra.mxu3 %vm215_vm1, %v334_v40 }
 0x2d0   :  { %1988 = vmatmul.msk.f32.vlgmr.msra.gmra.mxu3 %vm215_vm1, %v512_v6 }
 0x2d8   :  { %1989 = vmatmul.msk.f32.gmra.mxu3 %vm215_vm1, %v514_v7 }
 0x333   :  { %v325_v8 = vpop.f32.mrf.mxu2 }
 0x334   :  { %1984 = vmatmul.msk.f32.vlgmr.msra.gmra.mxu1 %vm215_vm1, %v325_v8 }
 0x33b   :  { %v328_v9 = vpop.f32.mrf.mxu3 }
 0x33c   :  { %1985 = vmatmul.msk.f32.gmra.mxu1 %vm215_vm1, %v328_v9 }
 0x343   :  { %v364_v12 = vpop.f32.mrf.mxu3 }
 0x344   :  { %v365_v13 = vadd.f32 %v364_v12, %v2642_v17  ;;  %1996 = vmatmul.msk.f32.vlgmr.msrb.gmra.mxu1 %vm215_vm1, %v665_v10 }
 0x346   :  { %v370_v14 = vsel %vm247_vm2, %v365_v13, -inf }
 0x347   :  { %371 = vmax.xlane.f32.xlu1 %v370_v14 }
 0x34b   :  { %v367_v16 = vpop.f32.mrf.mxu3 }
 0x34c   :  { %v368_v18 = vadd.f32 %v367_v16, %v2646_v21  ;;  %1997 = vmatmul.msk.f32.gmra.mxu1 %vm215_vm1, %v667_v15 }
 0x34e   :  { %v373_v19 = vsel %vm247_vm2, %v368_v18, -inf }
 0x34f   :  { %374 = vmax.xlane.f32.xlu0 %v373_v19 }
 0x353   :  { %v544_v20 = vpop.f32.mrf.mxu3 }
 0x354   :  { %v545_v22 = vadd.f32 %v544_v20, %v2642_v17 }
 0x356   :  { %v550_v23 = vsel %vm247_vm2, %v545_v22, -inf }
 0x357   :  { %551 = vmax.xlane.f32.xlu1 %v550_v23 }
 0x35b   :  { %v547_v24 = vpop.f32.mrf.mxu3 }
 0x35c   :  { %v548_v25 = vadd.f32 %v547_v24, %v2646_v21 }
 0x35e   :  { %v553_v26 = vsel %vm247_vm2, %v548_v25, -inf }
 0x35f   :  { %554 = vmax.xlane.f32.xlu0 %v553_v26 }
 0x3b1   :  { %v2689_v27 = vpop.f32.mrf.mxu1 }
 0x3b9   :  { %v2691_v28 = vpop.f32.mrf.mxu1 }
 0x3ba   :  { %v372_v29 = vpop.xlane.xlu1 %371 }
 0x3bb   :  { %v376_v30 = vsub.f32 %v365_v13, %v372_v29 }
 0x3bd   :  { %v378_v31 = vmul.f32 1.442695, %v376_v30 }
 0x3bf   :  { %2163 = vpow2.f32 %v378_v31 }
 0x3c1   :  { %v697_v32 = vpop.f32.mrf.mxu1 }
 0x3c2   :  { %v698_v33 = vadd.f32 %v697_v32, %v2642_v17  ;;  %v375_v34 = vpop.xlane.xlu0 %374 }
 0x3c3   :  { %v377_v35 = vsub.f32 %v368_v18, %v375_v34 }
 0x3c4   :  { %v703_v36 = vsel %vm247_vm2, %v698_v33, -inf }
 0x3c5   :  { %v2695_v37 = vpop.eup %2163  ;;  %704 = vmax.xlane.f32.xlu2 %v703_v36  ;;  %v380_v39 = vmul.f32 1.442695, %v377_v35 }
 0x3c6   :  { %v382_v38 = vsel %vm247_vm2, %v2695_v37, 0.0 }
 0x3c7   :  { %383 = vadd.xlane.f32.xlu1 %v382_v38  ;;  %2165 = vpow2.f32 %v380_v39 }
 0x3c9   :  { %v700_v40 = vpop.f32.mrf.mxu1 }
 0x3ca   :  { %v701_v41 = vadd.f32 %v700_v40, %v2646_v21  ;;  %v552_v42 = vpop.xlane.xlu1 %551 }
 0x3cb   :  { %v556_v43 = vsub.f32 %v545_v22, %v552_v42 }
 0x3cc   :  { %v706_v17 = vsel %vm247_vm2, %v701_v41, -inf }
 0x3cd   :  { %v558_v44 = vmul.f32 1.442695, %v556_v43  ;;  %707 = vmax.xlane.f32.xlu2 %v706_v17  ;;  %v2701_v45 = vpop.eup %2165 }
 0x3ce   :  { %v385_v48 = vsel %vm247_vm2, %v2701_v45, 0.0 }
 0x3cf   :  { %2167 = vpow2.f32 %v558_v44 }
 0x3d2   :  { %v555_v46 = vpop.xlane.xlu0 %554 }
 0x3d3   :  { %v557_v47 = vsub.f32 %v548_v25, %v555_v46 }
 0x3d5   :  { %v2705_v49 = vpop.eup %2167  ;;  %v560_v50 = vmul.f32 1.442695, %v557_v47  ;;  %386 = vadd.xlane.f32.xlu2 %v385_v48 }
 0x3d6   :  { %v562_v21 = vsel %vm247_vm2, %v2705_v49, 0.0 }
 0x3d7   :  { %2169 = vpow2.f32 %v560_v50  ;;  %563 = vadd.xlane.f32.xlu1 %v562_v21 }
 0x3dd   :  { %v2709_v51 = vpop.eup %2169 }
 0x3de   :  { %v565_v52 = vsel %vm247_vm2, %v2709_v51, 0.0 }
 0x3df   :  { %566 = vadd.xlane.f32.xlu1 %v565_v52 }
 0x3ed   :  { %2103 = vrot.lane.b32.xlu2 %v2625_v11, %s2464_s29 }
 0x3f8   :  { %2113 = vrot.lane.b32.xlu1 %v2625_v11, %s2465_s0 }
 0x438   :  { %v705_v53 = vpop.xlane.xlu2 %704 }
 0x439   :  { %v709_v54 = vsub.f32 %v698_v33, %v705_v53 }
 0x43a   :  { %v384_v55 = vpop.xlane.xlu1 %383 }
 0x43b   :  { %v711_v56 = vmul.f32 1.442695, %v709_v54  ;;  %2171 = vrcp.f32 %v384_v55  ;;  %v399_v8 = vand.u32 2147483648, %v384_v55  ;;  %vm393_vm12 = vweird.f32 %v384_v55 }
 0x43c   :  { %v397_v9 = vand.u32 2147483647, %v384_v55 }
 0x43d   :  { %2173 = vpow2.f32 %v711_v56  ;;  %v400_v14 = vor.u32 1.1754944e-38, %v399_v8 }
 0x43e   :  { %vm398_vm14 = vcmp.eq.f32.partialorder %v397_v9, 8.507059e+37 }
 0x440   :  { %v708_v57 = vpop.xlane.xlu2 %707 }
 0x441   :  { %v2172_v58 = vpop.eup %2171  ;;  %v710_v59 = vsub.f32 %v701_v41, %v708_v57 }
 0x442   :  { %v389_v60 = vmul.f32 %v2172_v58, %v384_v55  ;;  %vm394_vm11 = vweird.f32 %v2172_v58 }
 0x443   :  { %v2717_v61 = vpop.eup %2173  ;;  %v713_v62 = vmul.f32 1.442695, %v710_v59  ;;  %vm395_vm13 = vmor %vm393_vm12, %vm394_vm11 }
 0x444   :  { %v390_v63 = vsub.f32 1.0, %v389_v60  ;;  %v715_v0 = vsel %vm247_vm2, %v2717_v61, 0.0  ;;  %v206_v60 = vld [vmem:[%s3061_s4 + $0x8] sm:$0xff] }
 0x445   :  { %2175 = vpow2.f32 %v713_v62  ;;  %716 = vadd.xlane.f32.xlu0 %v715_v0  ;;  %474 = vmatpush.msrb.mxu0 %v206_v60 }
 0x446   :  { %v391_v1 = vmul.f32 %v2172_v58, %v390_v63 }
 0x448   :  { %v387_v2 = vpop.xlane.xlu2 %386  ;;  %v392_v3 = vadd.f32 %v2172_v58, %v391_v1 }
 0x449   :  { %2177 = vrcp.f32 %v387_v2  ;;  %v413_v22 = vand.u32 2147483648, %v387_v2  ;;  %v411_v29 = vand.u32 2147483647, %v387_v2  ;;  %vm407_vm3 = vweird.f32 %v387_v2 }
 0x44a   :  { %v564_v6 = vpop.xlane.xlu1 %563  ;;  %v396_v12 = vsel %vm395_vm13, %v2172_v58, %v392_v3 }
 0x44b   :  { %v2721_v7 = vpop.eup %2175  ;;  %2179 = vrcp.f32 %v564_v6  ;;  %v401_v19 = vsel %vm398_vm14, %v400_v14, %v396_v12  ;;  %v414_v32 = vor.u32 1.1754944e-38, %v413_v22  ;;  %vm412_vm5 = vcmp.eq.f32.partialorder %v411_v29, 8.507059e+37 }
 0x44c   :  { %v718_v10 = vsel %vm247_vm2, %v2721_v7, 0.0  ;;  %v416_v26 = vmul.f32 %v2695_v37, %v401_v19  ;;  %v579_v43 = vand.u32 2147483648, %v564_v6  ;;  %vm573_vm7 = vweird.f32 %v564_v6 }
 0x44d   :  { %719 = vadd.xlane.f32.xlu0 %v718_v10  ;;  %v577_v17 = vand.u32 2147483647, %v564_v6 }
 0x44e   :  { %v580_v47 = vor.u32 1.1754944e-38, %v579_v43 }
 0x44f   :  { %v2178_v13 = vpop.eup %2177  ;;  %vm578_vm9 = vcmp.eq.f32.partialorder %v577_v17, 8.507059e+37 }
 0x450   :  { %v403_v15 = vmul.f32 %v2178_v13, %v387_v2  ;;  %v2104_v16 = vpop.permute.xlu2 %2103  ;;  %vm408_vm15 = vweird.f32 %v2178_v13 }
 0x451   :  { %v2105_v18 = vunpack.i.l.bf16 %v2104_v16  ;;  %v2106_v23 = vunpack.i.h.bf16 %v2104_v16  ;;  %v2180_v30 = vpop.eup %2179  ;;  %vm409_vm4 = vmor %vm407_vm3, %vm408_vm15 }
 0x452   :  { %v404_v20 = vsub.f32 1.0, %v403_v15  ;;  %v567_v25 = vpop.xlane.xlu1 %566  ;;  %v569_v33 = vmul.f32 %v2180_v30, %v564_v6  ;;  %vm574_vm6 = vweird.f32 %v2180_v30  ;;  %v207_v15 = vld [vmem:[%s3061_s4 + $0x10] sm:$0xff] }
 0x453   :  { %444 = vmatpush.msrb.mxu2 %v2105_v18  ;;  %2181 = vrcp.f32 %v567_v25  ;;  %vm575_vm8 = vmor %vm573_vm7, %vm574_vm6  ;;  %v593_v52 = vand.u32 2147483648, %v567_v25  ;;  %vm587_vm11 = vweird.f32 %v567_v25  ;;  %v591_v54 = vand.u32 2147483647, %v567_v25  ;;  %654 = vmatpush.msra.mxu0 %v207_v15  ;;  %v932_v15 = vld [vmem:[%s3065_s8 + $0x28] sm:$0xff] }
 0x454   :  { %v405_v24 = vmul.f32 %v2178_v13, %v404_v20  ;;  %v570_v36 = vsub.f32 1.0, %v569_v33 }
 0x455   :  { %445 = vmatpush.msrb.mxu2 %v2106_v23  ;;  %v594_v56 = vor.u32 1.1754944e-38, %v593_v52  ;;  %vm592_vm13 = vcmp.eq.f32.partialorder %v591_v54, 8.507059e+37 }
 0x456   :  { %1980 = vmatmul.msk.f32.vlgmr.msrb.gmra.mxu2 %vm247_vm2, %v416_v26  ;;  %v406_v31 = vadd.f32 %v2178_v13, %v405_v24  ;;  %v571_v37 = vmul.f32 %v2180_v30, %v570_v36 }
 0x458   :  { %v410_v34 = vsel %vm409_vm4, %v2178_v13, %v406_v31  ;;  %v572_v41 = vadd.f32 %v2180_v30, %v571_v37 }
 0x459   :  { %v415_v35 = vsel %vm412_vm5, %v414_v32, %v410_v34  ;;  %v2182_v39 = vpop.eup %2181  ;;  %v208_v34 = vld [vmem:[%s3061_s4 + $0x18] sm:$0xff] }
 0x45a   :  { %v417_v38 = vmul.f32 %v2701_v45, %v415_v35  ;;  %v583_v40 = vmul.f32 %v2182_v39, %v567_v25  ;;  %v576_v44 = vsel %vm575_vm8, %v2180_v30, %v572_v41  ;;  %vm588_vm10 = vweird.f32 %v2182_v39  ;;  %v2138_v41 = vld [vmem:[#allocation7] ss:$0 sm:$0xff] }
 0x45b   :  { %v581_v48 = vsel %vm578_vm9, %v580_v47, %v576_v44  ;;  %vm589_vm12 = vmor %vm587_vm11, %vm588_vm10 }
 0x45c   :  { %v584_v42 = vsub.f32 1.0, %v583_v40 }
 0x45e   :  { %1981 = vmatmul.msk.f32.gmra.mxu2 %vm247_vm2, %v417_v38  ;;  %v585_v46 = vmul.f32 %v2182_v39, %v584_v42 }
 0x460   :  { %v586_v21 = vadd.f32 %v2182_v39, %v585_v46 }
 0x461   :  { %2108 = vrot.lane.b32.xlu0 %v2625_v11, %s2466_s18  ;;  %v596_v11 = vmul.f32 %v2705_v49, %v581_v48 }
 0x462   :  { %v590_v55 = vsel %vm589_vm12, %v2182_v39, %v586_v21 }
 0x463   :  { %v595_v57 = vsel %vm592_vm13, %v594_v56, %v590_v55 }
 0x464   :  { %v597_v58 = vmul.f32 %v2709_v51, %v595_v57 }
 0x46a   :  { %v2114_v45 = vpop.permute.xlu1 %2113 }
 0x46b   :  { %v2115_v50 = vunpack.i.l.bf16 %v2114_v45  ;;  %v2116_v53 = vunpack.i.h.bf16 %v2114_v45 }
 0x46d   :  { %624 = vmatpush.msra.mxu2 %v2115_v50 }
 0x46f   :  { %625 = vmatpush.msra.mxu2 %v2116_v53 }
 0x470   :  { %1990 = vmatmul.msk.f32.vlgmr.msra.gmra.mxu2 %vm247_vm2, %v596_v11  ;;  %v2467_v11 = vmov 32.0  }
 0x471   :  { %807 = vmatpush.msrb.mxu2 %v208_v34 }
 0x478   :  { %1991 = vmatmul.msk.f32.gmra.mxu2 %vm247_vm2, %v597_v58 }
 0x4b8   :  { %v717_v59 = vpop.xlane.xlu0 %716 }
 0x4b9   :  { %2183 = vrcp.f32 %v717_v59  ;;  %v732_v8 = vand.u32 2147483648, %v717_v59  ;;  %vm726_vm15 = vweird.f32 %v717_v59  ;;  %v730_v9 = vand.u32 2147483647, %v717_v59 }
 0x4bb   :  { %v733_v13 = vor.u32 1.1754944e-38, %v732_v8  ;;  %vm731_vm4 = vcmp.eq.f32.partialorder %v730_v9, 8.507059e+37  ;;  %v888_v8 = vld [vmem:[%s3063_s6] sm:$0xff] }
 0x4bf   :  { %v2184_v49 = vpop.eup %2183 }
 0x4c0   :  { %v720_v62 = vpop.xlane.xlu0 %719  ;;  %v722_v63 = vmul.f32 %v2184_v49, %v717_v59  ;;  %vm727_vm14 = vweird.f32 %v2184_v49 }
 0x4c1   :  { %2185 = vrcp.f32 %v720_v62  ;;  %vm728_vm3 = vmor %vm726_vm15, %vm727_vm14  ;;  %v746_v20 = vand.u32 2147483648, %v720_v62  ;;  %vm740_vm6 = vweird.f32 %v720_v62  ;;  %v744_v24 = vand.u32 2147483647, %v720_v62 }
 0x4c2   :  { %v723_v0 = vsub.f32 1.0, %v722_v63  ;;  %2187 = vrcp.f32 %v2467_v11  ;;  %v2142_v11 = vld [vmem:[#allocation10] ss:$0 sm:$0xff] }
 0x4c3   :  { %v747_v29 = vor.u32 1.1754944e-38, %v746_v20  ;;  %vm745_vm8 = vcmp.eq.f32.partialorder %v744_v24, 8.507059e+37 }
 0x4c4   :  { %v724_v2 = vmul.f32 %v2184_v49, %v723_v0 }
 0x4c6   :  { %v725_v6 = vadd.f32 %v2184_v49, %v724_v2 }
 0x4c7   :  { %v2186_v1 = vpop.eup %2185 }
 0x4c8   :  { %v736_v3 = vmul.f32 %v2186_v1, %v720_v62  ;;  %v729_v10 = vsel %vm728_vm3, %v2184_v49, %v725_v6  ;;  %vm741_vm5 = vweird.f32 %v2186_v1  ;;  %v2188_v54 = vpop.eup %2187  ;;  %v890_v6 = vld [vmem:[%s3063_s6 + $0x10] sm:$0xff]  ;;  %vm939_vm3 = vcmask 523264  }
 0x4c9   :  { %v734_v16 = vsel %vm731_vm4, %v733_v13, %v729_v10  ;;  %vm742_vm7 = vmor %vm740_vm6, %vm741_vm5  ;;  %v834_v55 = vmul.f32 32.0, %v2188_v54  ;;  %vm838_vm9 = vweird.f32 %v2188_v54  ;;  %v934_v13 = vld [vmem:[%s3065_s8 + $0x38] sm:$0xff] }
 0x4ca   :  { %v737_v51 = vsub.f32 1.0, %v736_v3  ;;  %v749_v23 = vmul.f32 %v2717_v61, %v734_v16  ;;  %v891_v3 = vld [vmem:[%s3063_s6 + $0x18] sm:$0xff]  ;;  %954 = vmatpush.msra.mxu1 %v934_v13 }
 0x4cb   :  { %v835_v56 = vsub.f32 1.0, %v834_v55 }
 0x4cc   :  { %v738_v12 = vmul.f32 %v2186_v1, %v737_v51  ;;  %v889_v51 = vld [vmem:[%s3063_s6 + $0x8] sm:$0xff] }
 0x4ce   :  { %v739_v19 = vadd.f32 %v2186_v1, %v738_v12 }
 0x4d0   :  { %v743_v26 = vsel %vm742_vm7, %v2186_v1, %v739_v19  ;;  %v931_v19 = vld [vmem:[%s3065_s8 + $0x20] sm:$0xff] }
 0x4d1   :  { %v748_v30 = vsel %vm745_vm8, %v747_v29, %v743_v26 }
 0x4d2   :  { %v750_v31 = vmul.f32 %v2721_v7, %v748_v30 }
 0x4d3   :  { %v2109_v14 = vpop.permute.xlu0 %2108 }
 0x4d4   :  { %v2110_v18 = vunpack.i.l.bf16 %v2109_v14  ;;  %v2111_v22 = vunpack.i.h.bf16 %v2109_v14  ;;  %v933_v14 = vld [vmem:[%s3065_s8 + $0x30] sm:$0xff] }
 0x4d5   :  { %955 = vmatpush.msra.mxu1 %v933_v14 }
 0x4d6   :  { %777 = vmatpush.msrb.mxu3 %v2110_v18 }
 0x4d7   :  { %956 = vmatpush.msra.mxu1 %v932_v15 }
 0x4d8   :  { %778 = vmatpush.msrb.mxu3 %v2111_v22 }
 0x4d9   :  { %v447_v25 = vpop.f32.mrf.mxu2  ;;  %1998 = vmatmul.msk.f32.vlgmr.msrb.gmra.mxu3 %vm247_vm2, %v749_v23  ;;  %v930_v23 = vld [vmem:[%s3065_s8 + $0x18] sm:$0xff]  ;;  %957 = vmatpush.msra.mxu1 %v931_v19 }
 0x4da   :  { %1982 = vmatmul.msk.f32.vlgmr.msrb.gmra.mxu0 %vm215_vm1, %v447_v25 }
 0x4db   :  { %914 = vmatpush.msrb.mxu0 %v891_v3  ;;  %958 = vmatpush.msra.mxu1 %v930_v23 }
 0x4dd   :  { %915 = vmatpush.msrb.mxu0 %v890_v6 }
 0x4df   :  { %916 = vmatpush.msrb.mxu0 %v889_v51 }
 0x4e1   :  { %v450_v32 = vpop.f32.mrf.mxu2  ;;  %1999 = vmatmul.msk.f32.gmra.mxu3 %vm247_vm2, %v750_v31  ;;  %917 = vmatpush.msrb.mxu0 %v888_v8  ;;  %v2009_v8 = vld [vmem:[%s3059_s2 + $0x38] sm:$0xff] }
 0x4e2   :  { %1983 = vmatmul.msk.f32.gmra.mxu0 %vm215_vm1, %v450_v32  ;;  %1055 = vmatpush.msra.mxu3 %v2009_v8 }
 0x4f3   :  { %v627_v61 = vpop.f32.mrf.mxu2 }
 0x4f4   :  { %1992 = vmatmul.msk.f32.vlgmr.msra.gmra.mxu0 %vm215_vm1, %v627_v61  ;;  %v2139_v61 = vld [vmem:[%s3067_s10] ss:$0 sm:$0xff] }
 0x4fb   :  { %v630_v33 = vpop.f32.mrf.mxu2 }
 0x4fc   :  { %1993 = vmatmul.msk.f32.gmra.mxu0 %vm215_vm1, %v630_v33 }
 0x557   :  { %v476_v36 = vpop.f32.mrf.mxu0 }
 0x558   :  { %v506_v37 = vadd.f32 %v2689_v27, %v476_v36 }
 0x55c   :  { %v780_v35 = vpop.f32.mrf.mxu3 }
 0x55d   :  { %2000 = vmatmul.msk.f32.vlgmr.msrb.gmra.mxu2 %vm215_vm1, %v780_v35 }
 0x55f   :  { %v479_v38 = vpop.f32.mrf.mxu0 }
 0x560   :  { %v509_v46 = vadd.f32 %v2691_v28, %v479_v38  ;;  %v836_v28 = vmul.f32 %v2188_v54, %v835_v56 }
 0x562   :  { %v837_v57 = vadd.f32 %v2188_v54, %v836_v28 }
 0x564   :  { %v783_v7 = vpop.f32.mrf.mxu3 }
 0x565   :  { %2001 = vmatmul.msk.f32.gmra.mxu2 %vm215_vm1, %v783_v7  ;;  %v2140_v7 = vld [vmem:[#allocation11] ss:$0 sm:$0xff] }
 0x571   :  { %v656_v39 = vpop.f32.mrf.mxu0 }
 0x572   :  { %v662_v40 = vadd.f32 %v656_v39, %v506_v37 }
 0x579   :  { %v659_v44 = vpop.f32.mrf.mxu0 }
 0x57a   :  { %v663_v45 = vadd.f32 %v659_v44, %v509_v46  ;;  %v929_v44 = vld [vmem:[%s3065_s8 + $0x10] sm:$0xff]  ;;  %v928_v46 = vld [vmem:[%s3065_s8 + $0x8] sm:$0xff] }
 0x57b   :  { %959 = vmatpush.msra.mxu1 %v929_v44 }
 0x57d   :  { %960 = vmatpush.msra.mxu1 %v928_v46 }
 0x5e0   :  { %v809_v42 = vpop.f32.mrf.mxu2 }
 0x5e1   :  { %v815_v43 = vadd.f32 %v809_v42, %v662_v40 }
 0x5e3   :  { %v821_v17 = vadd.f32 %v2138_v41, %v815_v43 }
 0x5e5   :  { %v823_v47 = vadd.f32 %v821_v17, %v2608_v4  ;;  %v2760_v4 = vsel %vm838_vm9, %v2188_v54, %v837_v57 }
 0x5e7   :  { %v827_v48 = vsel %vm175_vm0, %v823_v47, 0.0 }
 0x5e8   :  { %v812_v50 = vpop.f32.mrf.mxu2  ;;  %828 = vadd.xlane.f32.xlu2 %v827_v48 }
 0x5e9   :  { %v816_v21 = vadd.f32 %v812_v50, %v663_v45  ;;  %v2141_v45 = vld [vmem:[#allocation8] ss:$0 sm:$0xff] }
 0x5eb   :  { %v822_v52 = vadd.f32 %v2138_v41, %v816_v21 }
 0x5ed   :  { %v824_v53 = vadd.f32 %v822_v52, %v2610_v5 }
 0x5ef   :  { %v830_v27 = vsel %vm175_vm0, %v824_v53, 0.0 }
 0x5f0   :  { %831 = vadd.xlane.f32.xlu0 %v830_v27 }
 0x65b   :  { %v829_v58 = vpop.xlane.xlu2 %828 }
 0x65c   :  { %v840_v59 = vmul.f32 %v2760_v4, %v829_v58 }
 0x65e   :  { %v842_v60 = vsub.f32 %v823_v47, %v840_v59  ;;  %v927_v47 = vld [vmem:[%s3065_s8] sm:$0xff] }
 0x65f   :  { %961 = vmatpush.msra.mxu1 %v927_v47 }
 0x660   :  { %v844_v49 = vmul.f32 %v842_v60, %v842_v60 }
 0x662   :  { %v846_v5 = vsel %vm175_vm0, %v844_v49, 0.0 }
 0x663   :  { %847 = vadd.xlane.f32.xlu1 %v846_v5  ;;  %v832_v62 = vpop.xlane.xlu0 %831 }
 0x664   :  { %v841_v63 = vmul.f32 %v2760_v4, %v832_v62 }
 0x666   :  { %v843_v0 = vsub.f32 %v824_v53, %v841_v63 }
 0x668   :  { %v845_v1 = vmul.f32 %v843_v0, %v843_v0 }
 0x66a   :  { %v849_v2 = vsel %vm175_vm0, %v845_v1, 0.0 }
 0x66b   :  { %850 = vadd.xlane.f32.xlu2 %v849_v2 }
 0x6d6   :  { %v848_v9 = vpop.xlane.xlu1 %847 }
 0x6d7   :  { %v852_v10 = vmul.f32 %v848_v9, %v2760_v4  ;;  %v2008_v9 = vld [vmem:[%s3059_s2 + $0x30] sm:$0xff] }
 0x6d8   :  { %1056 = vmatpush.msra.mxu3 %v2008_v9 }
 0x6d9   :  { %v854_v12 = vadd.f32 1e-05, %v852_v10  ;;  %v2007_v10 = vld [vmem:[%s3059_s2 + $0x28] sm:$0xff] }
 0x6da   :  { %1057 = vmatpush.msra.mxu3 %v2007_v10 }
 0x6db   :  { %2189 = vrsqrt.f32 %v854_v12  ;;  %vm862_vm11 = vweird.f32 %v854_v12 }
 0x6de   :  { %v851_v16 = vpop.xlane.xlu2 %850 }
 0x6df   :  { %v853_v18 = vmul.f32 %v851_v16, %v2760_v4 }
 0x6e1   :  { %v2190_v20 = vpop.eup %2189  ;;  %v855_v22 = vadd.f32 1e-05, %v853_v18 }
 0x6e2   :  { %v857_v24 = vmul.f32 %v2190_v20, %v854_v12  ;;  %vm863_vm10 = vweird.f32 %v2190_v20  ;;  %v2006_v12 = vld [vmem:[%s3059_s2 + $0x20] sm:$0xff] }
 0x6e3   :  { %2191 = vrsqrt.f32 %v855_v22  ;;  %vm864_vm12 = vmor %vm862_vm11, %vm863_vm10  ;;  %vm872_vm14 = vweird.f32 %v855_v22  ;;  %1058 = vmatpush.msra.mxu3 %v2006_v12 }
 0x6e4   :  { %v858_v25 = vmul.f32 %v2190_v20, %v857_v24 }
 0x6e6   :  { %v859_v26 = vmul.f32 0.5, %v858_v25 }
 0x6e8   :  { %v860_v29 = vsub.f32 1.5, %v859_v26 }
 0x6e9   :  { %v2192_v30 = vpop.eup %2191 }
 0x6ea   :  { %v861_v31 = vmul.f32 %v2190_v20, %v860_v29  ;;  %v867_v32 = vmul.f32 %v2192_v30, %v855_v22  ;;  %vm873_vm13 = vweird.f32 %v2192_v30 }
 0x6eb   :  { %vm874_vm15 = vmor %vm872_vm14, %vm873_vm13 }
 0x6ec   :  { %v865_v33 = vsel %vm864_vm12, %v2190_v20, %v861_v31  ;;  %v868_v34 = vmul.f32 %v2192_v30, %v867_v32  ;;  %v2143_v31 = vld [vmem:[%s3069_s12] ss:$0 sm:$0xff] }
 0x6ed   :  { %v876_v35 = vmul.f32 %v865_v33, %v842_v60 }
 0x6ee   :  { %v869_v36 = vmul.f32 0.5, %v868_v34  ;;  %v2144_v34 = vld [vmem:[#allocation13] ss:$0 sm:$0xff] }
 0x6ef   :  { %v881_v38 = vmul.f32 %v2139_v61, %v876_v35 }
 0x6f0   :  { %v870_v39 = vsub.f32 1.5, %v869_v36 }
 0x6f1   :  { %v886_v37 = vadd.f32 %v2140_v7, %v881_v38 }
 0x6f2   :  { %v871_v40 = vmul.f32 %v2192_v30, %v870_v39 }
 0x6f3   :  { %2002 = vmatmul.msk.f32.vlgmr.msrb.gmra.mxu0 %vm175_vm0, %v886_v37 }
 0x6f4   :  { %v875_v41 = vsel %vm874_vm15, %v2192_v30, %v871_v40 }
 0x6f5   :  { %v877_v42 = vmul.f32 %v875_v41, %v843_v0 }
 0x6f7   :  { %v882_v43 = vmul.f32 %v2139_v61, %v877_v42 }
 0x6f9   :  { %v887_v17 = vadd.f32 %v2140_v7, %v882_v43  ;;  %v2145_v43 = vld [vmem:[%s3060_s3 + $0x1] ss:$0 sm:$0xff] }
 0x6fb   :  { %2003 = vmatmul.msk.f32.gmra.mxu0 %vm175_vm0, %v887_v17 }
 0x770   :  { %v919_v48 = vpop.f32.mrf.mxu0 }
 0x771   :  { %v920_v50 = vadd.f32 %v2141_v45, %v919_v48 }
 0x773   :  { %v925_v21 = vmax.f32 %v920_v50, 0.0 }
 0x775   :  { %2004 = vmatmul.msk.f32.vlgmr.msra.gmra.mxu1 %vm939_vm3, %v925_v21 }
 0x778   :  { %v922_v52 = vpop.f32.mrf.mxu0 }
 0x779   :  { %v923_v53 = vadd.f32 %v2141_v45, %v922_v52 }
 0x77b   :  { %v926_v27 = vmax.f32 %v923_v53, 0.0 }
 0x77d   :  { %2005 = vmatmul.msk.f32.gmra.mxu1 %vm939_vm3, %v926_v27 }
 0x7f2   :  { %v963_v54 = vpop.f32.mrf.mxu1 }
 0x7f3   :  { %v964_v55 = vadd.f32 %v2142_v11, %v963_v54 }
 0x7f5   :  { %v969_v56 = vadd.f32 %v964_v55, %v886_v37 }
 0x7f7   :  { %v973_v28 = vsel %vm175_vm0, %v969_v56, 0.0 }
 0x7f8   :  { %974 = vadd.xlane.f32.xlu0 %v973_v28  ;;  %v2865_v28 = vld [vmem:[#allocation5 + $0x8] sm:$0xff] }
 0x7fa   :  { %v966_v57 = vpop.f32.mrf.mxu1 }
 0x7fb   :  { %v967_v58 = vadd.f32 %v2142_v11, %v966_v57  ;;  %v2861_v11 = vld [vmem:[#allocation5] sm:$0xff] }
 0x7fd   :  { %v970_v59 = vadd.f32 %v967_v58, %v887_v17 }
 0x7ff   :  { %v976_v60 = vsel %vm175_vm0, %v970_v59, 0.0 }
 0x800   :  { %977 = vadd.xlane.f32.xlu2 %v976_v60 }
 0x86b   :  { %v975_v49 = vpop.xlane.xlu0 %974 }
 0x86c   :  { %v979_v5 = vmul.f32 %v975_v49, %v2760_v4 }
 0x86e   :  { %v981_v62 = vsub.f32 %v969_v56, %v979_v5 }
 0x870   :  { %v983_v63 = vmul.f32 %v981_v62, %v981_v62 }
 0x872   :  { %v985_v0 = vsel %vm175_vm0, %v983_v63, 0.0 }
 0x873   :  { %v978_v1 = vpop.xlane.xlu2 %977  ;;  %986 = vadd.xlane.f32.xlu1 %v985_v0 }
 0x874   :  { %v980_v2 = vmul.f32 %v978_v1, %v2760_v4 }
 0x876   :  { %v982_v3 = vsub.f32 %v970_v59, %v980_v2 }
 0x878   :  { %v984_v6 = vmul.f32 %v982_v3, %v982_v3 }
 0x87a   :  { %v988_v51 = vsel %vm175_vm0, %v984_v6, 0.0  ;;  %v2013_v6 = vld [vmem:[%s3061_s4 + $0x20] sm:$0xff] }
 0x87b   :  { %989 = vadd.xlane.f32.xlu0 %v988_v51 }
 0x8e6   :  { %v987_v13 = vpop.xlane.xlu1 %986 }
 0x8e7   :  { %v991_v14 = vmul.f32 %v987_v13, %v2760_v4 }
 0x8e9   :  { %v993_v15 = vadd.f32 1e-05, %v991_v14 }
 0x8eb   :  { %2193 = vrsqrt.f32 %v993_v15  ;;  %vm1001_vm5 = vweird.f32 %v993_v15 }
 0x8ee   :  { %v990_v16 = vpop.xlane.xlu0 %989 }
 0x8ef   :  { %v992_v18 = vmul.f32 %v990_v16, %v2760_v4 }
 0x8f1   :  { %v2194_v19 = vpop.eup %2193  ;;  %v994_v20 = vadd.f32 1e-05, %v992_v18 }
 0x8f2   :  { %v996_v22 = vmul.f32 %v2194_v19, %v993_v15  ;;  %vm1002_vm4 = vweird.f32 %v2194_v19 }
 0x8f3   :  { %2195 = vrsqrt.f32 %v994_v20  ;;  %vm1003_vm6 = vmor %vm1001_vm5, %vm1002_vm4  ;;  %vm1011_vm8 = vweird.f32 %v994_v20 }
 0x8f4   :  { %v997_v23 = vmul.f32 %v2194_v19, %v996_v22 }
 0x8f6   :  { %v998_v24 = vmul.f32 0.5, %v997_v23 }
 0x8f8   :  { %v999_v25 = vsub.f32 1.5, %v998_v24 }
 0x8f9   :  { %v2196_v26 = vpop.eup %2195 }
 0x8fa   :  { %v1000_v29 = vmul.f32 %v2194_v19, %v999_v25  ;;  %v1006_v30 = vmul.f32 %v2196_v26, %v994_v20  ;;  %vm1012_vm7 = vweird.f32 %v2196_v26 }
 0x8fb   :  { %vm1013_vm9 = vmor %vm1011_vm8, %vm1012_vm7 }
 0x8fc   :  { %v1004_v32 = vsel %vm1003_vm6, %v2194_v19, %v1000_v29  ;;  %v1007_v61 = vmul.f32 %v2196_v26, %v1006_v30 }
 0x8fd   :  { %v1015_v33 = vmul.f32 %v1004_v32, %v981_v62 }
 0x8fe   :  { %v1008_v35 = vmul.f32 0.5, %v1007_v61 }
 0x8ff   :  { %v1020_v7 = vmul.f32 %v2143_v31, %v1015_v33 }
 0x900   :  { %v1009_v36 = vsub.f32 1.5, %v1008_v35 }
 0x901   :  { %v2834_v38 = vadd.f32 %v2144_v34, %v1020_v7 }
 0x902   :  { %v1010_v39 = vmul.f32 %v2196_v26, %v1009_v36 }
 0x903   :  { %2011 = vmatmul.msk.f32.vlgmr.msra.gmra.mxu3 %vm175_vm0, %v2834_v38 }
 0x904   :  { %v1014_v37 = vsel %vm1013_vm9, %v2196_v26, %v1010_v39 }
 0x905   :  { %v1016_v40 = vmul.f32 %v1014_v37, %v982_v3 }
 0x907   :  { %v1021_v41 = vmul.f32 %v2143_v31, %v1016_v40 }
 0x909   :  { %v2838_v42 = vadd.f32 %v2144_v34, %v1021_v41 }
 0x90b   :  { %2012 = vmatmul.msk.f32.gmra.mxu3 %vm175_vm0, %v2838_v42 }
 0x986   :  { %v1060_v17 = vpop.f32.mrf.mxu3 }
 0x987   :  { %v1061_v44 = vadd.f32 %v2145_v43, %v1060_v17 }
 0x989   :  { %1073 = vrot.lane.b32.xlu1 %v1061_v44, %s2456_s23 }
 0x98e   :  { %v1063_v46 = vpop.f32.mrf.mxu3 }
 0x98f   :  { %v1064_v47 = vadd.f32 %v2145_v43, %v1063_v46 }
 0x991   :  { %1075 = vrot.lane.b32.xlu2 %v1064_v47, %s2456_s23  ;;  %v2847_v45 = vpack.i.bf16 %v1061_v44, %v1064_v47 }
 0x993   :  { %2118 = vrot.lane.b32.xlu1 %v2847_v45, %s2457_s24 }
 0x99b   :  { %1195 = vrot.lane.b32.xlu1 %v1061_v44, %s2462_s11 }
 0x9a3   :  { %1191 = vrot.lane.b32.xlu1 %v1061_v44, %s2458_s1 }
 0x9ab   :  { %1377 = vrot.lane.b32.xlu1 %v1064_v47, %s2459_s5 }
 0x9b3   :  { %1371 = vrot.lane.b32.xlu1 %v1061_v44, %s2461_s28 }
 0x9bb   :  { %1373 = vrot.lane.b32.xlu1 %v1064_v47, %s2461_s28 }
 0x9c3   :  { %1526 = vrot.lane.b32.xlu1 %v1064_v47, %s2463_s9 }
 0x9eb   :  { %v1076_v48 = vpop.permute.xlu2 %1075 }
 0x9ec   :  { %2017 = vmatpush.xpose.msk.msra.mxu2 %vm215_vm1, %v1076_v48 }
 0x9fb   :  { %v1074_v50 = vpop.permute.xlu1 %1073 }
 0x9fc   :  { %2018 = vmatpush.xpose.msk.msra.mxu2 %vm215_vm1, %v1074_v50 }
 0x9ff   :  { %2019 = vmatmul.msk.f32.vlgmr.msra.gmra.mxu2 %vm215_vm1, %v1061_v44 }
 0xa05   :  { %v2119_v21 = vpop.permute.xlu1 %2118 }
 0xa06   :  { %v2120_v52 = vunpack.i.l.bf16 %v2119_v21  ;;  %v2121_v53 = vunpack.i.h.bf16 %v2119_v21 }
 0xa07   :  { %2020 = vmatmul.msk.f32.gmra.mxu2 %vm215_vm1, %v1064_v47 }
 0xa08   :  { %1182 = vmatpush.msra.mxu0 %v2120_v52 }
 0xa0a   :  { %1183 = vmatpush.msra.mxu0 %v2121_v53 }
 0xa0c   :  { %1363 = vmatpush.msrb.mxu0 %v2013_v6 }
 0xa0d   :  { %v1196_v8 = vpop.permute.xlu1 %1195 }
 0xa15   :  { %v1192_v18 = vpop.permute.xlu1 %1191 }
 0xa1d   :  { %v1378_v7 = vpop.permute.xlu1 %1377 }
 0xa25   :  { %v1372_v43 = vpop.permute.xlu1 %1371 }
 0xa82   :  { %v1102_v27 = vpop.f32.mrf.mxu2 }
 0xa83   :  { %v1103_v54 = vadd.f32 %v2861_v11, %v1102_v27 }
 0xa85   :  { %v1108_v55 = vsel %vm247_vm2, %v1103_v54, -inf }
 0xa86   :  { %1109 = vmax.xlane.f32.xlu0 %v1108_v55 }
 0xa8a   :  { %v1105_v56 = vpop.f32.mrf.mxu2 }
 0xa8b   :  { %v1106_v57 = vadd.f32 %v2865_v28, %v1105_v56 }
 0xa8d   :  { %v1111_v58 = vsel %vm247_vm2, %v1106_v57, -inf }
 0xa8e   :  { %1112 = vmax.xlane.f32.xlu0 %v1111_v58 }
 0xaf9   :  { %v1110_v59 = vpop.xlane.xlu0 %1109 }
 0xafa   :  { %v1114_v60 = vsub.f32 %v1103_v54, %v1110_v59 }
 0xafc   :  { %v1116_v49 = vmul.f32 1.442695, %v1114_v60 }
 0xafe   :  { %2197 = vpow2.f32 %v1116_v49 }
 0xb01   :  { %v1113_v5 = vpop.xlane.xlu0 %1112 }
 0xb02   :  { %v1115_v62 = vsub.f32 %v1106_v57, %v1113_v5 }
 0xb04   :  { %v2198_v63 = vpop.eup %2197  ;;  %v1118_v0 = vmul.f32 1.442695, %v1115_v62 }
 0xb05   :  { %v1120_v1 = vsel %vm247_vm2, %v2198_v63, 0.0 }
 0xb06   :  { %2199 = vpow2.f32 %v1118_v0  ;;  %1121 = vadd.xlane.f32.xlu0 %v1120_v1 }
 0xb0c   :  { %v2200_v2 = vpop.eup %2199 }
 0xb0d   :  { %v1123_v3 = vsel %vm247_vm2, %v2200_v2, 0.0 }
 0xb0e   :  { %1124 = vadd.xlane.f32.xlu2 %v1123_v3 }
 0xb1a   :  { %1197 = vrot.lane.b32.xlu0 %v1064_v47, %s2462_s11 }
 0xb22   :  { %1193 = vrot.lane.b32.xlu0 %v1064_v47, %s2458_s1 }
 0xb26   :  { %1530 = vrot.lane.b32.xlu2 %v1064_v47, %s2460_s7 }
 0xb2a   :  { %1375 = vrot.lane.b32.xlu0 %v1061_v44, %s2459_s5 }
 0xb32   :  { %1528 = vrot.lane.b32.xlu0 %v1061_v44, %s2460_s7 }
 0xb3a   :  { %1524 = vrot.lane.b32.xlu0 %v1061_v44, %s2463_s9  ;;  %v1374_v44 = vpop.permute.xlu1 %1373 }
 0xb42   :  { %v1527_v56 = vpop.permute.xlu1 %1526 }
 0xb79   :  { %v1122_v51 = vpop.xlane.xlu0 %1121 }
 0xb7a   :  { %2201 = vrcp.f32 %v1122_v51  ;;  %v1137_v14 = vand.u32 2147483648, %v1122_v51  ;;  %v1135_v16 = vand.u32 2147483647, %v1122_v51  ;;  %vm1131_vm11 = vweird.f32 %v1122_v51 }
 0xb7c   :  { %v1138_v22 = vor.u32 1.1754944e-38, %v1137_v14  ;;  %vm1136_vm13 = vcmp.eq.f32.partialorder %v1135_v16, 8.507059e+37 }
 0xb80   :  { %v2202_v9 = vpop.eup %2201 }
 0xb81   :  { %v1127_v10 = vmul.f32 %v2202_v9, %v1122_v51  ;;  %v1125_v12 = vpop.xlane.xlu2 %1124  ;;  %vm1132_vm10 = vweird.f32 %v2202_v9 }
 0xb82   :  { %2203 = vrcp.f32 %v1125_v12  ;;  %vm1133_vm12 = vmor %vm1131_vm11, %vm1132_vm10  ;;  %v1151_v30 = vand.u32 2147483648, %v1125_v12  ;;  %v1149_v33 = vand.u32 2147483647, %v1125_v12  ;;  %vm1145_vm15 = vweird.f32 %v1125_v12 }
 0xb83   :  { %v1128_v13 = vsub.f32 1.0, %v1127_v10 }
 0xb84   :  { %v1152_v35 = vor.u32 1.1754944e-38, %v1151_v30  ;;  %vm1150_vm5 = vcmp.eq.f32.partialorder %v1149_v33, 8.507059e+37 }
 0xb85   :  { %v1129_v15 = vmul.f32 %v2202_v9, %v1128_v13 }
 0xb87   :  { %v1130_v19 = vadd.f32 %v2202_v9, %v1129_v15 }
 0xb88   :  { %v2204_v20 = vpop.eup %2203 }
 0xb89   :  { %v1134_v23 = vsel %vm1133_vm12, %v2202_v9, %v1130_v19  ;;  %v1141_v24 = vmul.f32 %v2204_v20, %v1125_v12  ;;  %v1531_v61 = vpop.permute.xlu2 %1530  ;;  %vm1146_vm14 = vweird.f32 %v2204_v20 }
 0xb8a   :  { %v1139_v25 = vsel %vm1136_vm13, %v1138_v22, %v1134_v23  ;;  %vm1147_vm4 = vmor %vm1145_vm15, %vm1146_vm14 }
 0xb8b   :  { %v1142_v26 = vsub.f32 1.0, %v1141_v24  ;;  %v1154_v29 = vmul.f32 %v2198_v63, %v1139_v25 }
 0xb8c   :  { %v1198_v31 = vpop.permute.xlu0 %1197 }
 0xb8d   :  { %v1143_v32 = vmul.f32 %v2204_v20, %v1142_v26  ;;  %2021 = vmatmul.msk.f32.vlgmr.msra.gmra.mxu0 %vm247_vm2, %v1154_v29  ;;  %2023 = vmatpush.xpose.msk.msrb.mxu1 %vm215_vm1, %v1198_v31 }
 0xb8e   :  { %2041 = vmatpush.xpose.msk.msra.mxu0 %vm215_vm1, %v1531_v61 }
 0xb8f   :  { %v1144_v34 = vadd.f32 %v2204_v20, %v1143_v32 }
 0xb91   :  { %2024 = vmatpush.xpose.msk.msrb.mxu1 %vm215_vm1, %v1196_v8  ;;  %v1148_v36 = vsel %vm1147_vm4, %v2204_v20, %v1144_v34 }
 0xb92   :  { %v1153_v39 = vsel %vm1150_vm5, %v1152_v35, %v1148_v36 }
 0xb93   :  { %v1155_v37 = vmul.f32 %v2200_v2, %v1153_v39 }
 0xb94   :  { %2025 = vmatmul.msk.f32.vlgmr.msrb.gmra.mxu1 %vm215_vm1, %v1192_v18  ;;  %v1194_v40 = vpop.permute.xlu0 %1193 }
 0xb95   :  { %2033 = vmatpush.xpose.msk.msra.mxu1 %vm215_vm1, %v1378_v7  ;;  %2022 = vmatmul.msk.f32.gmra.mxu0 %vm247_vm2, %v1155_v37 }
 0xb9c   :  { %2026 = vmatmul.msk.f32.gmra.mxu1 %vm215_vm1, %v1194_v40  ;;  %v1376_v41 = vpop.permute.xlu0 %1375 }
 0xb9d   :  { %2034 = vmatpush.xpose.msk.msra.mxu1 %vm215_vm1, %v1376_v41 }
 0xba4   :  { %2035 = vmatmul.msk.f32.vlgmr.msra.gmra.mxu1 %vm215_vm1, %v1372_v43  ;;  %v1529_v17 = vpop.permute.xlu0 %1528 }
 0xba5   :  { %2042 = vmatpush.xpose.msk.msra.mxu0 %vm215_vm1, %v1529_v17 }
 0xbac   :  { %2036 = vmatmul.msk.f32.gmra.mxu1 %vm215_vm1, %v1374_v44  ;;  %v1525_v53 = vpop.permute.xlu0 %1524 }
 0xc0a   :  { %v1185_v46 = vpop.f32.mrf.mxu0 }
 0xc0b   :  { %2031 = vmatmul.msk.f32.vlgmr.msrb.gmra.mxu0 %vm215_vm1, %v1185_v46 }
 0xc11   :  { %v1224_v47 = vpop.f32.mrf.mxu1 }
 0xc12   :  { %v1225_v48 = vadd.f32 %v2861_v11, %v1224_v47  ;;  %v1188_v50 = vpop.f32.mrf.mxu0 }
 0xc13   :  { %2032 = vmatmul.msk.f32.gmra.mxu0 %vm215_vm1, %v1188_v50 }
 0xc14   :  { %v1230_v21 = vsel %vm247_vm2, %v1225_v48, -inf }
 0xc15   :  { %1231 = vmax.xlane.f32.xlu0 %v1230_v21 }
 0xc19   :  { %v1227_v52 = vpop.f32.mrf.mxu1 }
 0xc1a   :  { %v1228_v27 = vadd.f32 %v2865_v28, %v1227_v52 }
 0xc1b   :  { %2043 = vmatmul.msk.f32.vlgmr.msra.gmra.mxu0 %vm215_vm1, %v1525_v53 }
 0xc1c   :  { %v1233_v54 = vsel %vm247_vm2, %v1228_v27, -inf }
 0xc1d   :  { %1234 = vmax.xlane.f32.xlu1 %v1233_v54 }
 0xc21   :  { %v1404_v55 = vpop.f32.mrf.mxu1 }
 0xc22   :  { %v1405_v57 = vadd.f32 %v2861_v11, %v1404_v55 }
 0xc23   :  { %2044 = vmatmul.msk.f32.gmra.mxu0 %vm215_vm1, %v1527_v56 }
 0xc24   :  { %v1410_v58 = vsel %vm247_vm2, %v1405_v57, -inf }
 0xc25   :  { %1411 = vmax.xlane.f32.xlu2 %v1410_v58 }
 0xc29   :  { %v1407_v59 = vpop.f32.mrf.mxu1 }
 0xc2a   :  { %v1408_v60 = vadd.f32 %v2865_v28, %v1407_v59 }
 0xc2c   :  { %v1413_v49 = vsel %vm247_vm2, %v1408_v60, -inf }
 0xc2d   :  { %1414 = vmax.xlane.f32.xlu0 %v1413_v49 }
 0xc88   :  { %v2904_v5 = vpop.f32.mrf.mxu0  ;;  %v1232_v62 = vpop.xlane.xlu0 %1231 }
 0xc89   :  { %v1236_v63 = vsub.f32 %v1225_v48, %v1232_v62 }
 0xc8b   :  { %v1238_v0 = vmul.f32 1.442695, %v1236_v63 }
 0xc8d   :  { %2205 = vpow2.f32 %v1238_v0 }
 0xc90   :  { %v2906_v1 = vpop.f32.mrf.mxu0  ;;  %v1235_v2 = vpop.xlane.xlu1 %1234 }
 0xc91   :  { %v1237_v3 = vsub.f32 %v1228_v27, %v1235_v2 }
 0xc93   :  { %v2908_v6 = vpop.eup %2205  ;;  %v1240_v8 = vmul.f32 1.442695, %v1237_v3 }
 0xc94   :  { %v1242_v51 = vsel %vm247_vm2, %v2908_v6, 0.0 }
 0xc95   :  { %1243 = vadd.xlane.f32.xlu0 %v1242_v51  ;;  %2207 = vpow2.f32 %v1240_v8 }
 0xc98   :  { %v1412_v9 = vpop.xlane.xlu2 %1411  ;;  %v1557_v10 = vpop.f32.mrf.mxu0 }
 0xc99   :  { %v1558_v12 = vadd.f32 %v2861_v11, %v1557_v10  ;;  %v1416_v13 = vsub.f32 %v1405_v57, %v1412_v9  ;;  %v2014_v9 = vld [vmem:[%s3061_s4 + $0x28] sm:$0xff] }
 0xc9a   :  { %1334 = vmatpush.msrb.mxu2 %v2014_v9 }
 0xc9b   :  { %v1563_v14 = vsel %vm247_vm2, %v1558_v12, -inf  ;;  %v1418_v15 = vmul.f32 1.442695, %v1416_v13  ;;  %v2914_v16 = vpop.eup %2207 }
 0xc9c   :  { %1564 = vmax.xlane.f32.xlu1 %v1563_v14  ;;  %v1245_v11 = vsel %vm247_vm2, %v2914_v16, 0.0 }
 0xc9d   :  { %2209 = vpow2.f32 %v1418_v15 }
 0xca0   :  { %v1560_v18 = vpop.f32.mrf.mxu0  ;;  %v1415_v19 = vpop.xlane.xlu0 %1414 }
 0xca1   :  { %v1561_v20 = vadd.f32 %v2865_v28, %v1560_v18  ;;  %v1417_v22 = vsub.f32 %v1408_v60, %v1415_v19 }
 0xca3   :  { %v1420_v23 = vmul.f32 1.442695, %v1417_v22  ;;  %v1566_v24 = vsel %vm247_vm2, %v1561_v20, -inf  ;;  %v2920_v25 = vpop.eup %2209 }
 0xca4   :  { %1567 = vmax.xlane.f32.xlu2 %v1566_v24  ;;  %1246 = vadd.xlane.f32.xlu1 %v1245_v11  ;;  %v1422_v28 = vsel %vm247_vm2, %v2920_v25, 0.0 }
 0xca5   :  { %2211 = vpow2.f32 %v1420_v23 }
 0xca9   :  { %2123 = vrot.lane.b32.xlu0 %v2847_v45, %s2464_s29 }
 0xcab   :  { %v2924_v26 = vpop.eup %2211 }
 0xcac   :  { %1423 = vadd.xlane.f32.xlu2 %v1422_v28  ;;  %v1425_v29 = vsel %vm247_vm2, %v2924_v26, 0.0 }
 0xcad   :  { %1426 = vadd.xlane.f32.xlu1 %v1425_v29 }
 0xd08   :  { %v1244_v30 = vpop.xlane.xlu0 %1243 }
 0xd09   :  { %2213 = vrcp.f32 %v1244_v30  ;;  %v1259_v39 = vand.u32 2147483648, %v1244_v30  ;;  %vm1253_vm7 = vweird.f32 %v1244_v30  ;;  %v1257_v37 = vand.u32 2147483647, %v1244_v30 }
 0xd0b   :  { %v1260_v46 = vor.u32 1.1754944e-38, %v1259_v39  ;;  %vm1258_vm9 = vcmp.eq.f32.partialorder %v1257_v37, 8.507059e+37 }
 0xd0f   :  { %v2214_v31 = vpop.eup %2213  ;;  %v1565_v32 = vpop.xlane.xlu1 %1564 }
 0xd10   :  { %v1249_v61 = vmul.f32 %v2214_v31, %v1244_v30  ;;  %v1569_v33 = vsub.f32 %v1558_v12, %v1565_v32  ;;  %vm1254_vm6 = vweird.f32 %v2214_v31 }
 0xd11   :  { %vm1255_vm8 = vmor %vm1253_vm7, %vm1254_vm6 }
 0xd12   :  { %v1250_v34 = vsub.f32 1.0, %v1249_v61  ;;  %v1571_v35 = vmul.f32 1.442695, %v1569_v33 }
 0xd14   :  { %v1251_v7 = vmul.f32 %v2214_v31, %v1250_v34  ;;  %2215 = vpow2.f32 %v1571_v35 }
 0xd16   :  { %v1252_v36 = vadd.f32 %v2214_v31, %v1251_v7 }
 0xd17   :  { %v1568_v40 = vpop.xlane.xlu2 %1567  ;;  %v1247_v41 = vpop.xlane.xlu1 %1246 }
 0xd18   :  { %v1570_v43 = vsub.f32 %v1561_v20, %v1568_v40  ;;  %2217 = vrcp.f32 %v1247_v41  ;;  %v1256_v17 = vsel %vm1255_vm8, %v2214_v31, %v1252_v36  ;;  %v1273_v58 = vand.u32 2147483648, %v1247_v41 }
 0xd19   :  { %v1261_v21 = vsel %vm1258_vm9, %v1260_v46, %v1256_v17  ;;  %v1271_v49 = vand.u32 2147483647, %v1247_v41  ;;  %vm1267_vm11 = vweird.f32 %v1247_v41 }
 0xd1a   :  { %v2930_v44 = vpop.eup %2215  ;;  %v1573_v47 = vmul.f32 1.442695, %v1570_v43  ;;  %v1276_v55 = vmul.f32 %v2908_v6, %v1261_v21  ;;  %v1274_v63 = vor.u32 1.1754944e-38, %v1273_v58 }
 0xd1b   :  { %v2124_v48 = vpop.permute.xlu0 %2123  ;;  %v1575_v50 = vsel %vm247_vm2, %v2930_v44, 0.0  ;;  %vm1272_vm13 = vcmp.eq.f32.partialorder %v1271_v49, 8.507059e+37 }
 0xd1c   :  { %2219 = vpow2.f32 %v1573_v47  ;;  %v2125_v52 = vunpack.i.l.bf16 %v2124_v48  ;;  %1576 = vadd.xlane.f32.xlu2 %v1575_v50  ;;  %v2126_v27 = vunpack.i.h.bf16 %v2124_v48 }
 0xd1e   :  { %v2218_v53 = vpop.eup %2217  ;;  %1304 = vmatpush.msrb.mxu3 %v2125_v52 }
 0xd1f   :  { %v1263_v54 = vmul.f32 %v2218_v53, %v1247_v41  ;;  %vm1268_vm10 = vweird.f32 %v2218_v53  ;;  %v1424_v6 = vpop.xlane.xlu2 %1423 }
 0xd20   :  { %1305 = vmatpush.msrb.mxu3 %v2126_v27  ;;  %vm1269_vm12 = vmor %vm1267_vm11, %vm1268_vm10  ;;  %2221 = vrcp.f32 %v1424_v6  ;;  %v1427_v51 = vpop.xlane.xlu1 %1426  ;;  %vm1433_vm15 = vweird.f32 %v1424_v6  ;;  %v1437_v20 = vand.u32 2147483647, %v1424_v6 }
 0xd21   :  { %v1264_v56 = vsub.f32 1.0, %v1263_v54  ;;  %2027 = vmatmul.msk.f32.vlgmr.msrb.gmra.mxu3 %vm247_vm2, %v1276_v55  ;;  %2223 = vrcp.f32 %v1427_v51  ;;  %v1453_v61 = vand.u32 2147483648, %v1427_v51  ;;  %vm1447_vm7 = vweird.f32 %v1427_v51 }
 0xd22   :  { %v2936_v57 = vpop.eup %2219  ;;  %vm1438_vm5 = vcmp.eq.f32.partialorder %v1437_v20, 8.507059e+37  ;;  %v1451_v35 = vand.u32 2147483647, %v1427_v51 }
 0xd23   :  { %v1265_v59 = vmul.f32 %v2218_v53, %v1264_v56  ;;  %v1578_v60 = vsel %vm247_vm2, %v2936_v57, 0.0  ;;  %v1454_v39 = vor.u32 1.1754944e-38, %v1453_v61 }
 0xd24   :  { %1579 = vadd.xlane.f32.xlu1 %v1578_v60  ;;  %vm1452_vm9 = vcmp.eq.f32.partialorder %v1451_v35, 8.507059e+37 }
 0xd25   :  { %v1266_v62 = vadd.f32 %v2218_v53, %v1265_v59 }
 0xd26   :  { %v2222_v8 = vpop.eup %2221 }
 0xd27   :  { %v1270_v0 = vsel %vm1269_vm12, %v2218_v53, %v1266_v62  ;;  %v1429_v10 = vmul.f32 %v2222_v8, %v1424_v6  ;;  %v2224_v13 = vpop.eup %2223  ;;  %vm1434_vm14 = vweird.f32 %v2222_v8 }
 0xd28   :  { %v1275_v2 = vsel %vm1272_vm13, %v1274_v63, %v1270_v0  ;;  %v1443_v15 = vmul.f32 %v2224_v13, %v1427_v51  ;;  %vm1435_vm4 = vmor %vm1433_vm15, %vm1434_vm14  ;;  %vm1448_vm6 = vweird.f32 %v2224_v13 }
 0xd29   :  { %v1277_v3 = vmul.f32 %v2914_v16, %v1275_v2  ;;  %v1430_v12 = vsub.f32 1.0, %v1429_v10  ;;  %vm1449_vm8 = vmor %vm1447_vm7, %vm1448_vm6 }
 0xd2a   :  { %v1444_v19 = vsub.f32 1.0, %v1443_v15 }
 0xd2b   :  { %2028 = vmatmul.msk.f32.gmra.mxu3 %vm247_vm2, %v1277_v3  ;;  %v1431_v14 = vmul.f32 %v2222_v8, %v1430_v12 }
 0xd2c   :  { %v1445_v23 = vmul.f32 %v2224_v13, %v1444_v19 }
 0xd2d   :  { %v1432_v18 = vadd.f32 %v2222_v8, %v1431_v14 }
 0xd2e   :  { %v1446_v31 = vadd.f32 %v2224_v13, %v1445_v23 }
 0xd2f   :  { %v1436_v22 = vsel %vm1435_vm4, %v2222_v8, %v1432_v18 }
 0xd30   :  { %v1450_v36 = vsel %vm1449_vm8, %v2224_v13, %v1446_v31 }
 0xd31   :  { %v1455_v37 = vsel %vm1452_vm9, %v1454_v39, %v1450_v36 }
 0xd32   :  { %v1457_v43 = vmul.f32 %v2924_v26, %v1455_v37  ;;  %v2052_v37 = vld [vmem:[%s3063_s6 + $0x30] sm:$0xff] }
 0xd34   :  { %2128 = vrot.lane.b32.xlu2 %v2847_v45, %s2465_s0 }
 0xd3d   :  { %2133 = vrot.lane.b32.xlu1 %v2847_v45, %s2466_s18  ;;  %v1439_v45 = vand.u32 2147483648, %v1424_v6  ;;  %v2015_v6 = vld [vmem:[%s3061_s4 + $0x30] sm:$0xff] }
 0xd3e   :  { %1514 = vmatpush.msra.mxu2 %v2015_v6 }
 0xd3f   :  { %v1440_v24 = vor.u32 1.1754944e-38, %v1439_v45 }
 0xd41   :  { %v1441_v28 = vsel %vm1438_vm5, %v1440_v24, %v1436_v22 }
 0xd42   :  { %v1456_v34 = vmul.f32 %v2920_v25, %v1441_v28 }
 0xd8f   :  { %v1577_v16 = vpop.xlane.xlu2 %1576 }
 0xd90   :  { %2225 = vrcp.f32 %v1577_v16  ;;  %v1592_v50 = vand.u32 2147483648, %v1577_v16  ;;  %vm1586_vm11 = vweird.f32 %v1577_v16  ;;  %v1590_v21 = vand.u32 2147483647, %v1577_v16 }
 0xd92   :  { %v1593_v27 = vor.u32 1.1754944e-38, %v1592_v50  ;;  %vm1591_vm13 = vcmp.eq.f32.partialorder %v1590_v21, 8.507059e+37 }
 0xd96   :  { %v2226_v32 = vpop.eup %2225 }
 0xd97   :  { %v2129_v11 = vpop.permute.xlu2 %2128  ;;  %v1580_v30 = vpop.xlane.xlu1 %1579  ;;  %v1582_v7 = vmul.f32 %v2226_v32, %v1577_v16  ;;  %vm1587_vm10 = vweird.f32 %v2226_v32  ;;  %v2146_v16 = vld [vmem:[#allocation7 + $0x1] ss:$0 sm:$0xff] }
 0xd98   :  { %v2130_v29 = vunpack.i.l.bf16 %v2129_v11  ;;  %v2131_v33 = vunpack.i.h.bf16 %v2129_v11  ;;  %2227 = vrcp.f32 %v1580_v30  ;;  %vm1588_vm12 = vmor %vm1586_vm11, %vm1587_vm10  ;;  %v1606_v59 = vand.u32 2147483648, %v1580_v30 }
 0xd99   :  { %v1583_v40 = vsub.f32 1.0, %v1582_v7  ;;  %vm1600_vm15 = vweird.f32 %v1580_v30  ;;  %v1604_v62 = vand.u32 2147483647, %v1580_v30 }
 0xd9a   :  { %1484 = vmatpush.msra.mxu3 %v2130_v29  ;;  %v1607_v0 = vor.u32 1.1754944e-38, %v1606_v59 }
 0xd9b   :  { %v1584_v46 = vmul.f32 %v2226_v32, %v1583_v40  ;;  %vm1605_vm5 = vcmp.eq.f32.partialorder %v1604_v62, 8.507059e+37  ;;  %v2051_v40 = vld [vmem:[%s3063_s6 + $0x28] sm:$0xff]  ;;  %v2147_v62 = vld [vmem:[%s3067_s10 + $0x1] ss:$0 sm:$0xff] }
 0xd9c   :  { %1485 = vmatpush.msra.mxu3 %v2131_v33 }
 0xd9d   :  { %2037 = vmatmul.msk.f32.vlgmr.msra.gmra.mxu3 %vm247_vm2, %v1456_v34  ;;  %v1585_v25 = vadd.f32 %v2226_v32, %v1584_v46 }
 0xd9e   :  { %v2228_v41 = vpop.eup %2227 }
 0xd9f   :  { %v1596_v47 = vmul.f32 %v2228_v41, %v1580_v30  ;;  %v1589_v52 = vsel %vm1588_vm12, %v2226_v32, %v1585_v25  ;;  %vm1601_vm14 = vweird.f32 %v2228_v41  ;;  %v2062_v25 = vld [vmem:[%s3065_s8 + $0x70] sm:$0xff] }
 0xda0   :  { %v1594_v55 = vsel %vm1591_vm13, %v1593_v27, %v1589_v52  ;;  %vm1602_vm4 = vmor %vm1600_vm15, %vm1601_vm14  ;;  %v2060_v52 = vld [vmem:[%s3065_s8 + $0x60] sm:$0xff] }
 0xda1   :  { %v1597_v48 = vsub.f32 1.0, %v1596_v47  ;;  %v1609_v49 = vmul.f32 %v2930_v44, %v1594_v55  ;;  %v2016_v44 = vld [vmem:[%s3061_s4 + $0x38] sm:$0xff] }
 0xda2   :  { %1667 = vmatpush.msrb.mxu3 %v2016_v44  ;;  %v2063_v47 = vld [vmem:[%s3065_s8 + $0x78] sm:$0xff] }
 0xda3   :  { %v1598_v53 = vmul.f32 %v2228_v41, %v1597_v48  ;;  %1813 = vmatpush.msrb.mxu0 %v2063_v47  ;;  %v2061_v48 = vld [vmem:[%s3065_s8 + $0x68] sm:$0xff] }
 0xda4   :  { %v1307_v17 = vpop.f32.mrf.mxu3 }
 0xda5   :  { %2029 = vmatmul.msk.f32.vlgmr.msrb.gmra.mxu2 %vm215_vm1, %v1307_v17  ;;  %2038 = vmatmul.msk.f32.gmra.mxu3 %vm247_vm2, %v1457_v43  ;;  %v1599_v58 = vadd.f32 %v2228_v41, %v1598_v53 }
 0xda6   :  { %1814 = vmatpush.msrb.mxu0 %v2062_v25 }
 0xda7   :  { %v1603_v63 = vsel %vm1602_vm4, %v2228_v41, %v1599_v58  ;;  %v2050_v41 = vld [vmem:[%s3063_s6 + $0x20] sm:$0xff] }
 0xda8   :  { %v1608_v2 = vsel %vm1605_vm5, %v1607_v0, %v1603_v63  ;;  %1815 = vmatpush.msrb.mxu0 %v2061_v48 }
 0xda9   :  { %v1610_v3 = vmul.f32 %v2936_v57, %v1608_v2 }
 0xdaa   :  { %1816 = vmatpush.msrb.mxu0 %v2060_v52 }
 0xdae   :  { %v1310_v54 = vpop.f32.mrf.mxu3 }
 0xdaf   :  { %v2134_v26 = vpop.permute.xlu1 %2133  ;;  %2030 = vmatmul.msk.f32.gmra.mxu2 %vm215_vm1, %v1310_v54  ;;  %v2059_v54 = vld [vmem:[%s3065_s8 + $0x58] sm:$0xff] }
 0xdb0   :  { %v2135_v56 = vunpack.i.l.bf16 %v2134_v26  ;;  %v2136_v60 = vunpack.i.h.bf16 %v2134_v26  ;;  %1817 = vmatpush.msrb.mxu0 %v2059_v54 }
 0xdb2   :  { %1637 = vmatpush.msrb.mxu1 %v2135_v56 }
 0xdb4   :  { %1638 = vmatpush.msrb.mxu1 %v2136_v60 }
 0xdb5   :  { %2045 = vmatmul.msk.f32.vlgmr.msrb.gmra.mxu1 %vm247_vm2, %v1609_v49 }
 0xdbd   :  { %2046 = vmatmul.msk.f32.gmra.mxu1 %vm247_vm2, %v1610_v3  ;;  %v2148_v3 = vld [vmem:[#allocation11 + $0x1] ss:$0 sm:$0xff] }
 0xe20   :  { %v1487_v51 = vpop.f32.mrf.mxu3 }
 0xe21   :  { %2039 = vmatmul.msk.f32.vlgmr.msra.gmra.mxu2 %vm215_vm1, %v1487_v51 }
 0xe28   :  { %v1490_v8 = vpop.f32.mrf.mxu3  ;;  %v1336_v10 = vpop.f32.mrf.mxu2 }
 0xe29   :  { %2040 = vmatmul.msk.f32.gmra.mxu2 %vm215_vm1, %v1490_v8  ;;  %v1366_v14 = vadd.f32 %v2904_v5, %v1336_v10 }
 0xe32   :  { %v1640_v9 = vpop.f32.mrf.mxu1  ;;  %v1339_v12 = vpop.f32.mrf.mxu2 }
 0xe33   :  { %2047 = vmatmul.msk.f32.vlgmr.msrb.gmra.mxu3 %vm215_vm1, %v1640_v9  ;;  %v1369_v22 = vadd.f32 %v2906_v1, %v1339_v12 }
 0xe3a   :  { %v1643_v57 = vpop.f32.mrf.mxu1 }
 0xe3b   :  { %2048 = vmatmul.msk.f32.gmra.mxu3 %vm215_vm1, %v1643_v57 }
 0xea4   :  { %v1516_v13 = vpop.f32.mrf.mxu2 }
 0xea5   :  { %v1522_v15 = vadd.f32 %v1516_v13, %v1366_v14  ;;  %v2058_v14 = vld [vmem:[%s3065_s8 + $0x50] sm:$0xff] }
 0xea6   :  { %1818 = vmatpush.msrb.mxu0 %v2058_v14 }
 0xeac   :  { %v1519_v20 = vpop.f32.mrf.mxu2 }
 0xead   :  { %v1523_v24 = vadd.f32 %v1519_v20, %v1369_v22 }
 0xeb6   :  { %v1669_v18 = vpop.f32.mrf.mxu3 }
 0xeb7   :  { %v1675_v19 = vadd.f32 %v1669_v18, %v1522_v15  ;;  %v2057_v15 = vld [vmem:[%s3065_s8 + $0x48] sm:$0xff]  ;;  %v2149_v18 = vld [vmem:[#allocation8 + $0x1] ss:$0 sm:$0xff] }
 0xeb8   :  { %1819 = vmatpush.msrb.mxu0 %v2057_v15 }
 0xeb9   :  { %v1682_v45 = vadd.f32 %v2146_v16, %v1675_v19 }
 0xebb   :  { %v1684_v23 = vadd.f32 %v1682_v45, %v2834_v38 }
 0xebd   :  { %v1690_v11 = vsel %vm175_vm0, %v1684_v23, 0.0 }
 0xebe   :  { %v1672_v28 = vpop.f32.mrf.mxu3  ;;  %1691 = vadd.xlane.f32.xlu0 %v1690_v11  ;;  %v2150_v11 = vld [vmem:[#allocation10 + $0x1] ss:$0 sm:$0xff] }
 0xebf   :  { %v1676_v29 = vadd.f32 %v1672_v28, %v1523_v24 }
 0xec1   :  { %v1683_v30 = vadd.f32 %v2146_v16, %v1676_v29  ;;  %v2056_v16 = vld [vmem:[%s3065_s8 + $0x40] sm:$0xff] }
 0xec2   :  { %1820 = vmatpush.msrb.mxu0 %v2056_v16 }
 0xec3   :  { %v1685_v31 = vadd.f32 %v1683_v30, %v2838_v42  ;;  %v2053_v42 = vld [vmem:[%s3063_s6 + $0x38] sm:$0xff] }
 0xec4   :  { %1772 = vmatpush.msrb.mxu2 %v2053_v42 }
 0xec5   :  { %v1693_v5 = vsel %vm175_vm0, %v1685_v31, 0.0 }
 0xec6   :  { %1694 = vadd.xlane.f32.xlu2 %v1693_v5  ;;  %1773 = vmatpush.msrb.mxu2 %v2052_v37 }
 0xec8   :  { %1774 = vmatpush.msrb.mxu2 %v2051_v40 }
 0xeca   :  { %1775 = vmatpush.msrb.mxu2 %v2050_v41 }
 0xf31   :  { %v1692_v32 = vpop.xlane.xlu0 %1691 }
 0xf32   :  { %v1696_v61 = vmul.f32 %v1692_v32, %v2760_v4 }
 0xf34   :  { %v1698_v33 = vsub.f32 %v1684_v23, %v1696_v61 }
 0xf36   :  { %v1700_v34 = vmul.f32 %v1698_v33, %v1698_v33 }
 0xf38   :  { %v1702_v1 = vsel %vm175_vm0, %v1700_v34, 0.0 }
 0xf39   :  { %1703 = vadd.xlane.f32.xlu1 %v1702_v1  ;;  %v1695_v38 = vpop.xlane.xlu2 %1694 }
 0xf3a   :  { %v1697_v35 = vmul.f32 %v1695_v38, %v2760_v4 }
 0xf3c   :  { %v1699_v7 = vsub.f32 %v1685_v31, %v1697_v35 }
 0xf3e   :  { %v1701_v36 = vmul.f32 %v1699_v7, %v1699_v7 }
 0xf40   :  { %v1705_v39 = vsel %vm175_vm0, %v1701_v36, 0.0 }
 0xf41   :  { %1706 = vadd.xlane.f32.xlu0 %v1705_v39 }
 0xfac   :  { %v1704_v43 = vpop.xlane.xlu1 %1703 }
 0xfad   :  { %v1708_v17 = vmul.f32 %v1704_v43, %v2760_v4 }
 0xfaf   :  { %v1710_v46 = vadd.f32 1e-05, %v1708_v17 }
 0xfb1   :  { %2229 = vrsqrt.f32 %v1710_v46  ;;  %vm1718_vm2 = vweird.f32 %v1710_v46 }
 0xfb4   :  { %v1707_v50 = vpop.xlane.xlu0 %1706 }
 0xfb5   :  { %v1709_v21 = vmul.f32 %v1707_v50, %v2760_v4 }
 0xfb7   :  { %v2230_v53 = vpop.eup %2229  ;;  %v1711_v27 = vadd.f32 1e-05, %v1709_v21 }
 0xfb8   :  { %v1713_v26 = vmul.f32 %v2230_v53, %v1710_v46  ;;  %vm1719_vm1 = vweird.f32 %v2230_v53 }
 0xfb9   :  { %2231 = vrsqrt.f32 %v1711_v27  ;;  %vm1720_vm6 = vmor %vm1718_vm2, %vm1719_vm1  ;;  %vm1728_vm8 = vweird.f32 %v1711_v27 }
 0xfba   :  { %v1714_v55 = vmul.f32 %v2230_v53, %v1713_v26 }
 0xfbc   :  { %v1715_v56 = vmul.f32 0.5, %v1714_v55  ;;  %v2151_v55 = vld [vmem:[%s3069_s12 + $0x1] ss:$0 sm:$0xff] }
 0xfbe   :  { %v1716_v58 = vsub.f32 1.5, %v1715_v56 }
 0xfbf   :  { %v2232_v59 = vpop.eup %2231 }
 0xfc0   :  { %v1717_v60 = vmul.f32 %v2230_v53, %v1716_v58  ;;  %v1723_v49 = vmul.f32 %v2232_v59, %v1711_v27  ;;  %vm1729_vm7 = vweird.f32 %v2232_v59 }
 0xfc1   :  { %vm1730_vm9 = vmor %vm1728_vm8, %vm1729_vm7 }
 0xfc2   :  { %v1721_v63 = vsel %vm1720_vm6, %v2230_v53, %v1717_v60  ;;  %v1724_v0 = vmul.f32 %v2232_v59, %v1723_v49  ;;  %v2152_v60 = vld [vmem:[#allocation13 + $0x1] ss:$0 sm:$0xff] }
 0xfc3   :  { %v1732_v2 = vmul.f32 %v1721_v63, %v1698_v33 }
 0xfc4   :  { %v1725_v6 = vmul.f32 0.5, %v1724_v0 }
 0xfc5   :  { %v1737_v44 = vmul.f32 %v2147_v62, %v1732_v2 }
 0xfc6   :  { %v1726_v51 = vsub.f32 1.5, %v1725_v6 }
 0xfc7   :  { %v1742_v8 = vadd.f32 %v2148_v3, %v1737_v44 }
 0xfc8   :  { %v1727_v9 = vmul.f32 %v2232_v59, %v1726_v51 }
 0xfc9   :  { %2054 = vmatmul.msk.f32.vlgmr.msrb.gmra.mxu2 %vm175_vm0, %v1742_v8 }
 0xfca   :  { %v1731_v57 = vsel %vm1730_vm9, %v2232_v59, %v1727_v9 }
 0xfcb   :  { %v1733_v10 = vmul.f32 %v1731_v57, %v1699_v7 }
 0xfcd   :  { %v1738_v12 = vmul.f32 %v2147_v62, %v1733_v10 }
 0xfcf   :  { %v1743_v13 = vadd.f32 %v2148_v3, %v1738_v12 }
 0xfd1   :  { %2055 = vmatmul.msk.f32.gmra.mxu2 %vm175_vm0, %v1743_v13 }
0x104c   :  { %v1777_v19 = vpop.f32.mrf.mxu2 }
0x104d   :  { %v1778_v45 = vadd.f32 %v2149_v18, %v1777_v19 }
0x104f   :  { %v1783_v20 = vmax.f32 %v1778_v45, 0.0 }
0x1051   :  { %2064 = vmatmul.msk.f32.vlgmr.msrb.gmra.mxu0 %vm939_vm3, %v1783_v20 }
0x1054   :  { %v1780_v22 = vpop.f32.mrf.mxu2 }
0x1055   :  { %v1781_v23 = vadd.f32 %v2149_v18, %v1780_v22 }
0x1057   :  { %v1784_v24 = vmax.f32 %v1781_v23, 0.0 }
0x1059   :  { %2065 = vmatmul.msk.f32.gmra.mxu0 %vm939_vm3, %v1784_v24 }
0x10ce   :  { %v1822_v28 = vpop.f32.mrf.mxu0 }
0x10cf   :  { %v1823_v29 = vadd.f32 %v2150_v11, %v1822_v28 }
0x10d1   :  { %v1828_v30 = vadd.f32 %v1823_v29, %v1742_v8 }
0x10d3   :  { %v1834_v31 = vsel %vm175_vm0, %v1828_v30, 0.0 }
0x10d4   :  { %1835 = vadd.xlane.f32.xlu0 %v1834_v31 }
0x10d6   :  { %v1825_v5 = vpop.f32.mrf.mxu0 }
0x10d7   :  { %v1826_v32 = vadd.f32 %v2150_v11, %v1825_v5 }
0x10d9   :  { %v1829_v61 = vadd.f32 %v1826_v32, %v1743_v13 }
0x10db   :  { %v1837_v33 = vsel %vm175_vm0, %v1829_v61, 0.0 }
0x10dc   :  { %1838 = vadd.xlane.f32.xlu0 %v1837_v33 }
0x1147   :  { %v1836_v34 = vpop.xlane.xlu0 %1835 }
0x1148   :  { %v1840_v1 = vmul.f32 %v1836_v34, %v2760_v4 }
0x114a   :  { %v1842_v38 = vsub.f32 %v1828_v30, %v1840_v1  ;;  %v2153_v1 = vld [vmem:[%s3071_s14] ss:$0 sm:$0xff]  ;;  %s2468_s14 = smov [#allocation14]  }
0x114b   :  { %s1950_s17 = sshll.u32 %s2468_s14, 4  ;;  %s1951_s17 = int_to_ptr.vmem [resolvable:$true] %s1950_s17 }
0x114c   :  { %v1844_v35 = vmul.f32 %v1842_v38, %v1842_v38 }
0x114e   :  { %v1846_v7 = vsel %vm175_vm0, %v1844_v35, 0.0 }
0x114f   :  { %1847 = vadd.xlane.f32.xlu2 %v1846_v7  ;;  %v1839_v36 = vpop.xlane.xlu0 %1838  ;;  %v2154_v7 = vld [vmem:[%s3072_s15] ss:$0 sm:$0xff] }
0x1150   :  { %v1841_v39 = vmul.f32 %v1839_v36, %v2760_v4 }
0x1152   :  { %v1843_v42 = vsub.f32 %v1829_v61, %v1841_v39 }
0x1154   :  { %v1845_v37 = vmul.f32 %v1843_v42, %v1843_v42 }
0x1156   :  { %v1849_v40 = vsel %vm175_vm0, %v1845_v37, 0.0 }
0x1157   :  { %1850 = vadd.xlane.f32.xlu0 %v1849_v40 }
0x11c2   :  { %v1848_v41 = vpop.xlane.xlu2 %1847 }
0x11c3   :  { %v1852_v43 = vmul.f32 %v1848_v41, %v2760_v4 }
0x11c5   :  { %v1854_v17 = vadd.f32 1e-05, %v1852_v43 }
0x11c7   :  { %2233 = vrsqrt.f32 %v1854_v17  ;;  %vm1862_vm10 = vweird.f32 %v1854_v17 }
0x11ca   :  { %v1851_v46 = vpop.xlane.xlu0 %1850 }
0x11cb   :  { %v1853_v47 = vmul.f32 %v1851_v46, %v2760_v4 }
0x11cd   :  { %v2234_v25 = vpop.eup %2233  ;;  %v1855_v48 = vadd.f32 1e-05, %v1853_v47 }
0x11ce   :  { %v1857_v50 = vmul.f32 %v2234_v25, %v1854_v17  ;;  %vm1863_vm3 = vweird.f32 %v2234_v25 }
0x11cf   :  { %2235 = vrsqrt.f32 %v1855_v48  ;;  %vm1864_vm11 = vmor %vm1862_vm10, %vm1863_vm3  ;;  %vm1872_vm13 = vweird.f32 %v1855_v48 }
0x11d0   :  { %v1858_v21 = vmul.f32 %v2234_v25, %v1857_v50 }
0x11d2   :  { %v1859_v52 = vmul.f32 0.5, %v1858_v21 }
0x11d4   :  { %v1860_v53 = vsub.f32 1.5, %v1859_v52 }
0x11d5   :  { %v2236_v27 = vpop.eup %2235 }
0x11d6   :  { %v1861_v54 = vmul.f32 %v2234_v25, %v1860_v53  ;;  %v1867_v26 = vmul.f32 %v2236_v27, %v1855_v48  ;;  %vm1873_vm12 = vweird.f32 %v2236_v27 }
0x11d7   :  { %vm1874_vm14 = vmor %vm1872_vm13, %vm1873_vm12 }
0x11d8   :  { %v1868_v56 = vmul.f32 %v2236_v27, %v1867_v26  ;;  %v1865_v58 = vsel %vm1864_vm11, %v2234_v25, %v1861_v54 }
0x11d9   :  { %v1876_v59 = vmul.f32 %v1865_v58, %v1842_v38 }
0x11da   :  { %v1869_v49 = vmul.f32 0.5, %v1868_v56 }
0x11db   :  { %v1881_v62 = vmul.f32 %v2151_v55, %v1876_v59 }
0x11dc   :  { %v1870_v63 = vsub.f32 1.5, %v1869_v49 }
0x11dd   :  { %v1886_v0 = vadd.f32 %v2152_v60, %v1881_v62 }
0x11de   :  { %v1871_v2 = vmul.f32 %v2236_v27, %v1870_v63 }
0x11df   :  { %v1890_v3 = vsel %vm175_vm0, %v1886_v0, 0.0 }
0x11e0   :  { %1891 = vadd.xlane.f32.xlu1 %v1890_v3  ;;  %v1875_v6 = vsel %vm1874_vm14, %v2236_v27, %v1871_v2 }
0x11e1   :  { %v1877_v44 = vmul.f32 %v1875_v6, %v1843_v42 }
0x11e3   :  { %v1882_v51 = vmul.f32 %v2151_v55, %v1877_v44 }
0x11e5   :  { %v1887_v8 = vadd.f32 %v2152_v60, %v1882_v51 }
0x11e7   :  { %v1893_v9 = vsel %vm175_vm0, %v1887_v8, 0.0 }
0x11e8   :  { %1894 = vadd.xlane.f32.xlu2 %v1893_v9 }
0x1253   :  { %v1892_v57 = vpop.xlane.xlu1 %1891 }
0x1254   :  { %v1896_v10 = vmul.f32 %v1892_v57, %v2760_v4 }
0x1256   :  { %v1898_v12 = vsub.f32 %v1886_v0, %v1896_v10 }
0x1258   :  { %v1900_v13 = vmul.f32 %v1898_v12, %v1898_v12 }
0x125a   :  { %v1902_v14 = vsel %vm175_vm0, %v1900_v13, 0.0 }
0x125b   :  { %1903 = vadd.xlane.f32.xlu0 %v1902_v14  ;;  %v1895_v15 = vpop.xlane.xlu2 %1894 }
0x125c   :  { %v1897_v16 = vmul.f32 %v1895_v15, %v2760_v4 }
0x125e   :  { %v1899_v18 = vsub.f32 %v1887_v8, %v1897_v16 }
0x1260   :  { %v1901_v19 = vmul.f32 %v1899_v18, %v1899_v18 }
0x1262   :  { %v1905_v45 = vsel %vm175_vm0, %v1901_v19, 0.0 }
0x1263   :  { %1906 = vadd.xlane.f32.xlu1 %v1905_v45 }
0x12ce   :  { %v1904_v20 = vpop.xlane.xlu0 %1903 }
0x12cf   :  { %v1908_v22 = vmul.f32 %v1904_v20, %v2760_v4 }
0x12d1   :  { %v1910_v23 = vadd.f32 1e-05, %v1908_v22 }
0x12d3   :  { %2237 = vrsqrt.f32 %v1910_v23  ;;  %vm1918_vm4 = vweird.f32 %v1910_v23 }
0x12d6   :  { %v1907_v24 = vpop.xlane.xlu1 %1906 }
0x12d7   :  { %v1909_v11 = vmul.f32 %v1907_v24, %v2760_v4 }
0x12d9   :  { %v2238_v28 = vpop.eup %2237  ;;  %v1911_v29 = vadd.f32 1e-05, %v1909_v11 }
0x12da   :  { %v1913_v30 = vmul.f32 %v2238_v28, %v1910_v23  ;;  %vm1919_vm15 = vweird.f32 %v2238_v28 }
0x12db   :  { %2239 = vrsqrt.f32 %v1911_v29  ;;  %vm1920_vm5 = vmor %vm1918_vm4, %vm1919_vm15  ;;  %vm1928_vm2 = vweird.f32 %v1911_v29 }
0x12dc   :  { %v1914_v31 = vmul.f32 %v2238_v28, %v1913_v30 }
0x12de   :  { %v1915_v5 = vmul.f32 0.5, %v1914_v31 }
0x12e0   :  { %v1916_v32 = vsub.f32 1.5, %v1915_v5 }
0x12e1   :  { %v2240_v61 = vpop.eup %2239 }
0x12e2   :  { %v1917_v33 = vmul.f32 %v2238_v28, %v1916_v32  ;;  %v1923_v34 = vmul.f32 %v2240_v61, %v1911_v29  ;;  %vm1929_vm1 = vweird.f32 %v2240_v61 }
0x12e3   :  { %vm1930_vm6 = vmor %vm1928_vm2, %vm1929_vm1 }
0x12e4   :  { %v1921_v38 = vsel %vm1920_vm5, %v2238_v28, %v1917_v33  ;;  %v1924_v35 = vmul.f32 %v2240_v61, %v1923_v34 }
0x12e5   :  { %v1932_v4 = vmul.f32 %v1921_v38, %v1898_v12 }
0x12e6   :  { %v1925_v36 = vmul.f32 0.5, %v1924_v35 }
0x12e7   :  { %v1937_v39 = vmul.f32 %v2153_v1, %v1932_v4 }
0x12e8   :  { %v1926_v42 = vsub.f32 1.5, %v1925_v36 }
0x12e9   :  { %v1942_v37 = vadd.f32 %v2154_v7, %v1937_v39 }
0x12ea   :  { %v1927_v40 = vmul.f32 %v2240_v61, %v1926_v42 }
0x12eb   :  { %1944 = vst.msk [vmem:[#allocation14] sm:$0xff] %vm175_vm0, %v1942_v37 }
0x12ec   :  { %v1931_v41 = vsel %vm1930_vm6, %v2240_v61, %v1927_v40 }
0x12ed   :  { %v1933_v43 = vmul.f32 %v1931_v41, %v1899_v18 }
0x12ef   :  { %v1938_v17 = vmul.f32 %v2153_v1, %v1933_v43 }
0x12f1   :  { %v1943_v46 = vadd.f32 %v2154_v7, %v1938_v17 }
0x12f3   :  { %1945 = vst.msk [vmem:[#allocation14 + $0x8] sm:$0xff] %vm175_vm0, %v1943_v46 }
0x12f4   :  { %1958 = dma.vmem_to_hbm [thread:$0]  %s1951_s17, 256, %s1953_s13, [#allocation4], %s2446_s26, %s2446_s26, %s2447_s27  }
0x12f5   :  { %2443 = dma.done.wait [#allocation4], 256  }
0x12f6   :  { %2444 = vsyncadd [#allocation4], 4294967040 }
0x12f7   :  { %1963 = vsyncpa [#allocation3], 1 }
0x12f8   :  { %1964 = vsyncpa [#allocation6], 1 }
0x12f9   :  { %1965 = vsyncpa [#allocation9], 1 }
0x12fa   :  { %1966 = vsyncpa [#allocation12], 1 }
0x12fb   :  { %1967 = vsyncpa [#allocation4], 1 }

</bundles_post_ra>
